<compile_context>
chip_gen: v5e
topology: v5e:2x2
jax: 0.10.0
libtpu: 0.0.40
codegen_flags: <defaults>
</compile_context>

<pallas_src>
import functools

import jax
import jax.numpy as jnp
from jax.experimental import pallas as pl
from jax.experimental.pallas import tpu as pltpu

LN_EPS = 1e-5
NEG_INF = -1e30          # finite "minus infinity" for masked attention scores

_VMEM_LIMIT = None


def _vmem_limit_bytes():
    cap = 128 * 1024 * 1024
    try:
        info = pltpu.get_tpu_info()
        cap = int(getattr(info, "vmem_capacity_bytes", cap))
    except Exception:
        pass
    # ~0.8x physical (leave headroom for compiler scratch), capped at 100 MiB.
    return int(min(int(cap * 0.8), 100 * 1024 * 1024))


def _cparams(dim_sem):
    global _VMEM_LIMIT
    if _VMEM_LIMIT is None:
        _VMEM_LIMIT = _vmem_limit_bytes()
    return pltpu.CompilerParams(dimension_semantics=dim_sem,
                                vmem_limit_bytes=_VMEM_LIMIT)


def _row_tile(n, max_tile=512):
    """Row (second-to-last dim) tile: multiple-of-8 divisor of n, or full."""
    for t in (max_tile, 512, 256, 128, 64, 32, 16, 8):
        if t <= n and n % t == 0:
            return t
    return n


def _seq_tile(n, max_tile=512):
    """Lane-ish tile: multiple of 128 that divides n, else full."""
    t = max_tile
    while t >= 128:
        if t <= n and n % t == 0:
            return t
        t //= 2
    return n


def _layer_norm(x, g, b):
    mu = jnp.mean(x, axis=-1, keepdims=True)
    var = jnp.mean((x - mu) ** 2, axis=-1, keepdims=True)
    return (x - mu) * jax.lax.rsqrt(var + LN_EPS) * g + b


def _gelu(x):
    # TODO(synk): PyTorch nn.GELU defaults to exact erf; tanh approx differs ~1e-3.
    c = 0.7978845608028654  # sqrt(2/pi)
    return 0.5 * x * (1.0 + jnp.tanh(c * (x + 0.044715 * x * x * x)))


# --------------------------------------------------------------------------
# kernels
# --------------------------------------------------------------------------

def qkv_proj_kernel(x_ref, ln_g, ln_b, wq, bq, wk, bk, wv, bv,
                    q_ref, k_ref, v_ref, *, scale):
    """Pre-norm + Q/K/V projections for a (tile_rows, D) slab (bf16 MXU, f32 acc)."""
    x = x_ref[...].astype(jnp.float32)
    h = _layer_norm(x, ln_g[0], ln_b[0])
    hb = h.astype(wq.dtype)                            # bf16 operand for the MXU
    q = jnp.dot(hb, wq[...], preferred_element_type=jnp.float32) + bq[0]
    k = jnp.dot(hb, wk[...], preferred_element_type=jnp.float32) + bk[0]
    v = jnp.dot(hb, wv[...], preferred_element_type=jnp.float32) + bv[0]
    q_ref[...] = (q * scale).astype(q_ref.dtype)
    k_ref[...] = k.astype(k_ref.dtype)
    v_ref[...] = v.astype(v_ref.dtype)


def flash_attn_kernel(*refs, has_attn_mask):
    """Online-softmax attention.  Q/K/V blocks arrive as (1, t, H, hd); the
    head swap to (H, t, hd) is done on the XLU (pltpu.einshape) so no HBM
    transpose is needed outside.  Bias = key-padding (1,1,tk) [+ attn (tq,tk)]."""
    if has_attn_mask:
        q_ref, k_ref, v_ref, kb_ref, am_ref, o_ref, m_sc, l_sc, acc_sc = refs
    else:
        q_ref, k_ref, v_ref, kb_ref, o_ref, m_sc, l_sc, acc_sc = refs
        am_ref = None

    kv = pl.program_id(2)

    @pl.when(kv == 0)
    def _():
        m_sc[...] = jnp.full(m_sc.shape, -jnp.inf, jnp.float32)
        l_sc[...] = jnp.zeros(l_sc.shape, jnp.float32)
        acc_sc[...] = jnp.zeros(acc_sc.shape, jnp.float32)

    # (t, H, hd) -> (H, t, hd) on the XLU (no HBM roundtrip).
    q = pltpu.einshape("qhd->hqd", q_ref[0])           # (H, tq, hd) bf16 (pre-scaled)
    k = pltpu.einshape("khd->hkd", k_ref[0])           # (H, tk, hd) bf16
    v = pltpu.einshape("khd->hkd", v_ref[0])           # (H, tk, hd) bf16

    s = jnp.einsum('hqd,hkd->hqk', q, k,
                   preferred_element_type=jnp.float32)  # (H, tq, tk) f32
    s = s + kb_ref[0]                                   # (1, tk) key-padding bias
    if am_ref is not None:
        s = s + am_ref[...][None]                       # (1, tq, tk) attn-mask bias

    m_prev = m_sc[...]
    m_new = jnp.maximum(m_prev, jnp.max(s, axis=-1, keepdims=True))
    alpha = jnp.exp(m_prev - m_new)
    p = jnp.exp(s - m_new)                              # f32 (see TODO on bf16 exp)
    l_sc[...] = alpha * l_sc[...] + jnp.sum(p, axis=-1, keepdims=True)
    acc_sc[...] = alpha * acc_sc[...] + jnp.einsum(
        'hqk,hkd->hqd', p.astype(v.dtype), v, preferred_element_type=jnp.float32)
    m_sc[...] = m_new

    @pl.when(kv == pl.num_programs(2) - 1)
    def _():
        out = acc_sc[...] * pl.reciprocal(l_sc[...], approx=True)
        o_ref[0] = pltpu.einshape("hqd->qhd", out).astype(o_ref.dtype)


def attn_ffn_kernel(x_ref, a_ref, wo, bo, ln2_g, ln2_b,
                    w1_ref, b1_ref, w2_ref, b2_ref, lnf_g, lnf_b,
                    o_ref, x1_sc, h_sc, acc_sc, *, apply_final_ln):
    """Fused: attn out-proj + residual + LN2 (at f==0), then FFN chunked over
    ffn_dim with bias+GELU fused, residual + optional final LN in the epilogue."""
    f = pl.program_id(1)

    @pl.when(f == 0)
    def _():
        x = x_ref[...].astype(jnp.float32)
        x1 = x + jnp.dot(a_ref[...], wo[...],
                         preferred_element_type=jnp.float32) + bo[0]
        x1_sc[...] = x1
        h_sc[...] = _layer_norm(x1, ln2_g[0], ln2_b[0]).astype(h_sc.dtype)
        acc_sc[...] = jnp.zeros(acc_sc.shape, jnp.float32)

    t = jnp.dot(h_sc[...], w1_ref[...], preferred_element_type=jnp.float32) + b1_ref[0]
    t = _gelu(t)                                                        # (tr, tf) f32
    acc_sc[...] += jnp.dot(t.astype(w2_ref.dtype), w2_ref[...],
                           preferred_element_type=jnp.float32)

    @pl.when(f == pl.num_programs(1) - 1)
    def _():
        out = x1_sc[...] + acc_sc[...] + b2_ref[0]
        if apply_final_ln:            # static (python) flag
            out = _layer_norm(out, lnf_g[0], lnf_b[0])
        o_ref[...] = out.astype(o_ref.dtype)


def layer_norm_kernel(x_ref, g_ref, b_ref, o_ref):
    o_ref[...] = _layer_norm(x_ref[...].astype(jnp.float32),
                             g_ref[0], b_ref[0]).astype(o_ref.dtype)


# --------------------------------------------------------------------------
# pallas_call wrappers
# --------------------------------------------------------------------------

def run_qkv_proj(x2, p, scale):
    rows, D = x2.shape
    tr = _row_tile(rows)
    row_spec = pl.BlockSpec((tr, D), lambda r: (r, 0))
    full = lambda a: pl.BlockSpec(a.shape, lambda r: (0, 0))
    sds = jax.ShapeDtypeStruct((rows, D), jnp.bfloat16)
    return pl.pallas_call(
        functools.partial(qkv_proj_kernel, scale=scale),
        out_shape=(sds, sds, sds),
        grid=(rows // tr,),
        in_specs=[row_spec,
                  full(p['ln1_g']), full(p['ln1_b']),
                  full(p['wq']), full(p['bq']),
                  full(p['wk']), full(p['bk']),
                  full(p['wv']), full(p['bv'])],
        out_specs=(row_spec, row_spec, row_spec),
        compiler_params=_cparams(("parallel",)),
    )(x2, p['ln1_g'], p['ln1_b'], p['wq'], p['bq'],
      p['wk'], p['bk'], p['wv'], p['bv'])


def run_flash_attention(q, k, v, key_bias, attn_mask):
    """q/k/v: (B, T, H, hd) bf16; key_bias: (B,1,T) f32; attn_mask: (T,T) f32 or None."""
    B, T, H, hd = q.shape
    tq = _row_tile(T, 256)
    tk = _seq_tile(T, 512)
    nQ, nK = T // tq, T // tk
    qo_spec = pl.BlockSpec((1, tq, H, hd), lambda b, qi, ki: (b, qi, 0, 0))
    kv_spec = pl.BlockSpec((1, tk, H, hd), lambda b, qi, ki: (b, ki, 0, 0))
    kb_spec = pl.BlockSpec((1, 1, tk), lambda b, qi, ki: (b, 0, ki))
    in_specs = [qo_spec, kv_spec, kv_spec, kb_spec]
    args = [q, k, v, key_bias]
    has_am = attn_mask is not None
    if has_am:
        in_specs.append(pl.BlockSpec((tq, tk), lambda b, qi, ki: (qi, ki)))
        args.append(attn_mask)
    return pl.pallas_call(
        functools.partial(flash_attn_kernel, has_attn_mask=has_am),
        out_shape=jax.ShapeDtypeStruct((B, T, H, hd), q.dtype),
        grid=(B, nQ, nK),
        in_specs=in_specs,
        out_specs=qo_spec,
        scratch_shapes=[pltpu.VMEM((H, tq, 1), jnp.float32),
                        pltpu.VMEM((H, tq, 1), jnp.float32),
                        pltpu.VMEM((H, tq, hd), jnp.float32)],
        compiler_params=_cparams(("parallel", "parallel", "arbitrary")),
    )(*args)


def run_attn_ffn(x2, attn2, p, final_ln):
    """Fused out-projection + residual + LN2 + chunked FFN (+ optional final LN)."""
    rows, D = x2.shape
    ffn_dim = p['w1'].shape[1]
    tr = _row_tile(rows)
    tf = _seq_tile(ffn_dim, 1024)
    apply_final = final_ln is not None
    lnf_g, lnf_b = final_ln if apply_final else (p['ln2_g'], p['ln2_b'])  # dummies
    row_spec = pl.BlockSpec((tr, D), lambda r, f: (r, 0))
    full = lambda a: pl.BlockSpec(a.shape, lambda r, f: (0, 0))
    return pl.pallas_call(
        functools.partial(attn_ffn_kernel, apply_final_ln=apply_final),
        out_shape=jax.ShapeDtypeStruct((rows, D), x2.dtype),
        grid=(rows // tr, ffn_dim // tf),
        in_specs=[row_spec, row_spec,
                  full(p['wo']), full(p['bo']),
                  full(p['ln2_g']), full(p['ln2_b']),
                  pl.BlockSpec((D, tf), lambda r, f: (0, f)),
                  pl.BlockSpec((1, tf), lambda r, f: (0, f)),
                  pl.BlockSpec((tf, D), lambda r, f: (f, 0)),
                  full(p['b2']), full(lnf_g), full(lnf_b)],
        out_specs=row_spec,
        scratch_shapes=[pltpu.VMEM((tr, D), jnp.float32),    # x1 (residual)
                        pltpu.VMEM((tr, D), jnp.bfloat16),   # LN2(x1) matmul operand
                        pltpu.VMEM((tr, D), jnp.float32)],   # FFN accumulator
        compiler_params=_cparams(("parallel", "arbitrary")),
    )(x2, attn2, p['wo'], p['bo'], p['ln2_g'], p['ln2_b'],
      p['w1'], p['b1'], p['w2'], p['b2'], lnf_g, lnf_b)


def run_layer_norm(x, g, b):
    B, T, D = x.shape
    rows = B * T
    tr = _row_tile(rows)
    x2 = x.reshape(rows, D)
    out = pl.pallas_call(
        layer_norm_kernel,
        out_shape=jax.ShapeDtypeStruct((rows, D), x.dtype),
        grid=(rows // tr,),
        in_specs=[pl.BlockSpec((tr, D), lambda r: (r, 0)),
                  pl.BlockSpec(g.shape, lambda r: (0, 0)),
                  pl.BlockSpec(b.shape, lambda r: (0, 0))],
        out_specs=pl.BlockSpec((tr, D), lambda r: (r, 0)),
        compiler_params=_cparams(("parallel",)),
    )(x2, g, b)
    return out.reshape(B, T, D)


def run_encoder_layer(x, key_bias, attn_mask, params, n_heads, final_ln=None):
    """One pre-norm transformer encoder layer."""
    B, T, D = x.shape
    hd = D // n_heads
    rows = B * T
    x2 = x.reshape(rows, D)

    # 1. pre-LN + Q/K/V projections (Q pre-scaled), bf16 outputs
    q2, k2, v2 = run_qkv_proj(x2, params, scale=float(hd) ** -0.5)

    # free reshapes only — the head swap happens on the XLU inside the kernel
    def split_heads(t):
        return t.reshape(B, T, n_heads, hd)

    # 2. flash-style attention over KV tiles, heads batched in the block
    attn4 = run_flash_attention(split_heads(q2), split_heads(k2), split_heads(v2),
                                key_bias, attn_mask)
    attn2 = attn4.reshape(rows, D)                       # free reshape (bf16)

    # 3+4. fused out-proj + residual + LN2 + chunked FFN (+ optional final LN)
    out2 = run_attn_ffn(x2, attn2, params, final_ln)
    return out2.reshape(B, T, D)


# --------------------------------------------------------------------------
# module wrapper
# --------------------------------------------------------------------------

class TransformerEncoderPallas:
    """Mirror of models/modules/transformer_encoder.TransformerEncoder (eval mode)."""

    def __init__(self, embed_dim, ffn_dim, n_heads, n_layers, key,
                 layer_norm_first=True):
        self.embed_dim = embed_dim
        self.n_heads = n_heads
        self.layer_norm_first = layer_norm_first

        def normal(k, shape):
            # matches init_bert_params: N(0, 0.02) weights, zero biases
            # weights stored bf16 (MXU-native); f32 accumulation in-kernel.
            return (0.02 * jax.random.normal(k, shape, jnp.float32)).astype(jnp.bfloat16)

        self.layer_params = []
        for i in range(n_layers):
            ks = jax.random.split(jax.random.fold_in(key, i), 6)
            self.layer_params.append(dict(
                ln1_g=jnp.ones((1, embed_dim), jnp.float32),
                ln1_b=jnp.zeros((1, embed_dim), jnp.float32),
                wq=normal(ks[0], (embed_dim, embed_dim)),
                bq=jnp.zeros((1, embed_dim), jnp.float32),
                wk=normal(ks[1], (embed_dim, embed_dim)),
                bk=jnp.zeros((1, embed_dim), jnp.float32),
                wv=normal(ks[2], (embed_dim, embed_dim)),
                bv=jnp.zeros((1, embed_dim), jnp.float32),
                wo=normal(ks[3], (embed_dim, embed_dim)),
                bo=jnp.zeros((1, embed_dim), jnp.float32),
                ln2_g=jnp.ones((1, embed_dim), jnp.float32),
                ln2_b=jnp.zeros((1, embed_dim), jnp.float32),
                w1=normal(ks[4], (embed_dim, ffn_dim)),
                b1=jnp.zeros((1, ffn_dim), jnp.float32),
                w2=normal(ks[5], (ffn_dim, embed_dim)),
                b2=jnp.zeros((1, embed_dim), jnp.float32),
            ))
        self.ln_g = jnp.ones((1, embed_dim), jnp.float32)
        self.ln_b = jnp.zeros((1, embed_dim), jnp.float32)

    def __call__(self, x, padding_mask=None, attn_mask=None):
        # x: (B, T, D); padding_mask: bool (B, T), True = padded;
        # attn_mask: (T, T) additive float or bool (True = masked).
        B, T, D = x.shape
        if padding_mask is not None:
            x = jnp.where(padding_mask[..., None], 0.0, x)     # x[padding_mask] = 0
        if not self.layer_norm_first:
            x = run_layer_norm(x, self.ln_g, self.ln_b)

        # additive biases passed SEPARATELY (never materialize (B, T, T))
        if padding_mask is not None:
            key_bias = jnp.where(padding_mask, NEG_INF, 0.0).astype(jnp.float32)
            key_bias = key_bias[:, None, :]                     # (B, 1, T)
        else:
            key_bias = jnp.zeros((B, 1, T), jnp.float32)
        if attn_mask is not None:
            if attn_mask.dtype == jnp.bool_:
                am = jnp.where(attn_mask, NEG_INF, 0.0).astype(jnp.float32)
            else:
                am = attn_mask.astype(jnp.float32)              # (T, T)
        else:
            am = None

        n_layers = len(self.layer_params)
        for li, lp in enumerate(self.layer_params):
            fuse_final = (li == n_layers - 1) and self.layer_norm_first
            x = run_encoder_layer(x, key_bias, am, lp, self.n_heads,
                                  final_ln=(self.ln_g, self.ln_b) if fuse_final else None)
        return x


if __name__ == "__main__":
    B, T, D, FFN, H, L = 2, 16, 256, 512, 4, 2        # hd = 64
    key = jax.random.PRNGKey(0)
    xk, pk = jax.random.split(key)
    x = jax.random.normal(xk, (B, T, D), jnp.float32)

    encoder = TransformerEncoderPallas(embed_dim=D, ffn_dim=FFN, n_heads=H,
                                       n_layers=L, key=pk, layer_norm_first=True)

    # unmasked forward
    out = encoder(x, padding_mask=None, attn_mask=None)
    out = jax.block_until_ready(out)
    assert out.shape == (B, T, D)
    assert bool(jnp.all(jnp.isfinite(out)))

    # masked forward (key padding + causal attn mask) to exercise the bias path
    padding_mask = jnp.zeros((B, T), jnp.bool_).at[1, -2:].set(True)
    attn_mask = jnp.triu(jnp.ones((T, T), jnp.bool_), k=1)      # True = masked
    out_m = encoder(x, padding_mask=padding_mask, attn_mask=attn_mask)
    out_m = jax.block_until_ready(out_m)
    assert out_m.shape == (B, T, D)
    assert bool(jnp.all(jnp.isfinite(out_m)))

    print("KERNEL_OK")
</pallas_src>

<mosaic_0001>
module attributes {stable_mosaic.version = 11 : i64} {
  func.func @qkv_proj_kernel(%arg0: i32, %arg1: memref<32x256xf32, #tpu.memory_space<vmem>>, %arg2: memref<1x256xf32, #tpu.memory_space<vmem>>, %arg3: memref<1x256xf32, #tpu.memory_space<vmem>>, %arg4: memref<256x256xbf16, #tpu.memory_space<vmem>>, %arg5: memref<1x256xf32, #tpu.memory_space<vmem>>, %arg6: memref<256x256xbf16, #tpu.memory_space<vmem>>, %arg7: memref<1x256xf32, #tpu.memory_space<vmem>>, %arg8: memref<256x256xbf16, #tpu.memory_space<vmem>>, %arg9: memref<1x256xf32, #tpu.memory_space<vmem>>, %arg10: memref<32x256xbf16, #tpu.memory_space<vmem>>, %arg11: memref<32x256xbf16, #tpu.memory_space<vmem>>, %arg12: memref<32x256xbf16, #tpu.memory_space<vmem>>) attributes {dimension_semantics = [#tpu.dimension_semantics<parallel>], iteration_bounds = array<i64: 1>, scalar_prefetch = 0 : i64, scratch_operands = 0 : i64, tpu.core_type = #tpu.core_type<tc>, window_params = [{transform_indices = @transform_0, window_bounds = array<i64: 32, 256>}, {pipeline_mode = #tpu.pipeline_mode<synchronous>, transform_indices = @transform_1, window_bounds = array<i64: 1, 256>}, {pipeline_mode = #tpu.pipeline_mode<synchronous>, transform_indices = @transform_2, window_bounds = array<i64: 1, 256>}, {pipeline_mode = #tpu.pipeline_mode<synchronous>, transform_indices = @transform_3, window_bounds = array<i64: 256, 256>}, {pipeline_mode = #tpu.pipeline_mode<synchronous>, transform_indices = @transform_4, window_bounds = array<i64: 1, 256>}, {pipeline_mode = #tpu.pipeline_mode<synchronous>, transform_indices = @transform_5, window_bounds = array<i64: 256, 256>}, {pipeline_mode = #tpu.pipeline_mode<synchronous>, transform_indices = @transform_6, window_bounds = array<i64: 1, 256>}, {pipeline_mode = #tpu.pipeline_mode<synchronous>, transform_indices = @transform_7, window_bounds = array<i64: 256, 256>}, {pipeline_mode = #tpu.pipeline_mode<synchronous>, transform_indices = @transform_8, window_bounds = array<i64: 1, 256>}, {transform_indices = @transform_9, window_bounds = array<i64: 32, 256>}, {transform_indices = @transform_10, window_bounds = array<i64: 32, 256>}, {transform_indices = @transform_11, window_bounds = array<i64: 32, 256>}]} {
    %c0 = arith.constant 0 : index
    %c0_0 = arith.constant 0 : index
    %0 = vector.load %arg1[%c0, %c0_0] : memref<32x256xf32, #tpu.memory_space<vmem>>, vector<32x256xf32>
    %c0_1 = arith.constant 0 : index
    %c0_2 = arith.constant 0 : index
    %1 = vector.load %arg2[%c0_1, %c0_2] : memref<1x256xf32, #tpu.memory_space<vmem>>, vector<1x256xf32>
    %2 = vector.shape_cast %1 : vector<1x256xf32> to vector<256xf32>
    %c0_3 = arith.constant 0 : index
    %c0_4 = arith.constant 0 : index
    %3 = vector.load %arg3[%c0_3, %c0_4] : memref<1x256xf32, #tpu.memory_space<vmem>>, vector<1x256xf32>
    %4 = vector.shape_cast %3 : vector<1x256xf32> to vector<256xf32>
    %cst = arith.constant dense<0.000000e+00> : vector<32xf32>
    %5 = vector.multi_reduction <add>, %0, %cst [1] : vector<32x256xf32> to vector<32xf32>
    %6 = vector.shape_cast %5 : vector<32xf32> to vector<32x1xf32>
    %cst_5 = arith.constant 2.560000e+02 : f32
    %7 = vector.broadcast %cst_5 : f32 to vector<32x1xf32>
    %8 = arith.divf %6, %7 : vector<32x1xf32>
    %9 = vector.broadcast %8 : vector<32x1xf32> to vector<32x256xf32>
    %10 = arith.subf %0, %9 : vector<32x256xf32>
    %11 = arith.mulf %10, %10 : vector<32x256xf32>
    %cst_6 = arith.constant dense<0.000000e+00> : vector<32xf32>
    %12 = vector.multi_reduction <add>, %11, %cst_6 [1] : vector<32x256xf32> to vector<32xf32>
    %13 = vector.shape_cast %12 : vector<32xf32> to vector<32x1xf32>
    %cst_7 = arith.constant 2.560000e+02 : f32
    %14 = vector.broadcast %cst_7 : f32 to vector<32x1xf32>
    %15 = arith.divf %13, %14 : vector<32x1xf32>
    %16 = vector.broadcast %8 : vector<32x1xf32> to vector<32x256xf32>
    %17 = arith.subf %0, %16 : vector<32x256xf32>
    %cst_8 = arith.constant 9.99999974E-6 : f32
    %18 = vector.broadcast %cst_8 : f32 to vector<32x1xf32>
    %19 = arith.addf %15, %18 : vector<32x1xf32>
    %20 = math.rsqrt %19 : vector<32x1xf32>
    %21 = vector.broadcast %20 : vector<32x1xf32> to vector<32x256xf32>
    %22 = arith.mulf %17, %21 : vector<32x256xf32>
    %23 = vector.shape_cast %2 : vector<256xf32> to vector<1x256xf32>
    %24 = vector.broadcast %23 : vector<1x256xf32> to vector<32x256xf32>
    %25 = arith.mulf %22, %24 : vector<32x256xf32>
    %26 = vector.shape_cast %4 : vector<256xf32> to vector<1x256xf32>
    %27 = vector.broadcast %26 : vector<1x256xf32> to vector<32x256xf32>
    %28 = arith.addf %25, %27 : vector<32x256xf32>
    %29 = arith.truncf %28 : vector<32x256xf32> to vector<32x256xbf16>
    %c0_9 = arith.constant 0 : index
    %c0_10 = arith.constant 0 : index
    %30 = vector.load %arg4[%c0_9, %c0_10] : memref<256x256xbf16, #tpu.memory_space<vmem>>, vector<256x256xbf16>
    %cst_11 = arith.constant dense<0.000000e+00> : vector<32x256xf32>
    %31 = tpu.matmul %29, %30, %cst_11 {dimension_numbers = #tpu.dot_dimension_numbers<[1], [0], [0], [1], [0, 0, 1, 1], [], []>} : vector<32x256xbf16>, vector<256x256xbf16>, vector<32x256xf32> -> vector<32x256xf32>
    %c0_12 = arith.constant 0 : index
    %c0_13 = arith.constant 0 : index
    %32 = vector.load %arg5[%c0_12, %c0_13] : memref<1x256xf32, #tpu.memory_space<vmem>>, vector<1x256xf32>
    %33 = vector.shape_cast %32 : vector<1x256xf32> to vector<256xf32>
    %34 = vector.shape_cast %33 : vector<256xf32> to vector<1x256xf32>
    %35 = vector.broadcast %34 : vector<1x256xf32> to vector<32x256xf32>
    %36 = arith.addf %31, %35 : vector<32x256xf32>
    %c0_14 = arith.constant 0 : index
    %c0_15 = arith.constant 0 : index
    %37 = vector.load %arg6[%c0_14, %c0_15] : memref<256x256xbf16, #tpu.memory_space<vmem>>, vector<256x256xbf16>
    %cst_16 = arith.constant dense<0.000000e+00> : vector<32x256xf32>
    %38 = tpu.matmul %29, %37, %cst_16 {dimension_numbers = #tpu.dot_dimension_numbers<[1], [0], [0], [1], [0, 0, 1, 1], [], []>} : vector<32x256xbf16>, vector<256x256xbf16>, vector<32x256xf32> -> vector<32x256xf32>
    %c0_17 = arith.constant 0 : index
    %c0_18 = arith.constant 0 : index
    %39 = vector.load %arg7[%c0_17, %c0_18] : memref<1x256xf32, #tpu.memory_space<vmem>>, vector<1x256xf32>
    %40 = vector.shape_cast %39 : vector<1x256xf32> to vector<256xf32>
    %41 = vector.shape_cast %40 : vector<256xf32> to vector<1x256xf32>
    %42 = vector.broadcast %41 : vector<1x256xf32> to vector<32x256xf32>
    %43 = arith.addf %38, %42 : vector<32x256xf32>
    %c0_19 = arith.constant 0 : index
    %c0_20 = arith.constant 0 : index
    %44 = vector.load %arg8[%c0_19, %c0_20] : memref<256x256xbf16, #tpu.memory_space<vmem>>, vector<256x256xbf16>
    %cst_21 = arith.constant dense<0.000000e+00> : vector<32x256xf32>
    %45 = tpu.matmul %29, %44, %cst_21 {dimension_numbers = #tpu.dot_dimension_numbers<[1], [0], [0], [1], [0, 0, 1, 1], [], []>} : vector<32x256xbf16>, vector<256x256xbf16>, vector<32x256xf32> -> vector<32x256xf32>
    %c0_22 = arith.constant 0 : index
    %c0_23 = arith.constant 0 : index
    %46 = vector.load %arg9[%c0_22, %c0_23] : memref<1x256xf32, #tpu.memory_space<vmem>>, vector<1x256xf32>
    %47 = vector.shape_cast %46 : vector<1x256xf32> to vector<256xf32>
    %48 = vector.shape_cast %47 : vector<256xf32> to vector<1x256xf32>
    %49 = vector.broadcast %48 : vector<1x256xf32> to vector<32x256xf32>
    %50 = arith.addf %45, %49 : vector<32x256xf32>
    %cst_24 = arith.constant 1.250000e-01 : f32
    %51 = vector.broadcast %cst_24 : f32 to vector<32x256xf32>
    %52 = arith.mulf %36, %51 : vector<32x256xf32>
    %53 = arith.truncf %52 : vector<32x256xf32> to vector<32x256xbf16>
    %c0_25 = arith.constant 0 : index
    %c0_26 = arith.constant 0 : index
    %54 = vector.load %arg10[%c0_25, %c0_26] : memref<32x256xbf16, #tpu.memory_space<vmem>>, vector<32x256xbf16>
    tpu.vector_store %arg10[%c0_25, %c0_26], %53 {strides = array<i32>} : memref<32x256xbf16, #tpu.memory_space<vmem>>, vector<32x256xbf16>,
    %55 = arith.truncf %43 : vector<32x256xf32> to vector<32x256xbf16>
    %c0_27 = arith.constant 0 : index
    %c0_28 = arith.constant 0 : index
    %56 = vector.load %arg11[%c0_27, %c0_28] : memref<32x256xbf16, #tpu.memory_space<vmem>>, vector<32x256xbf16>
    tpu.vector_store %arg11[%c0_27, %c0_28], %55 {strides = array<i32>} : memref<32x256xbf16, #tpu.memory_space<vmem>>, vector<32x256xbf16>,
    %57 = arith.truncf %50 : vector<32x256xf32> to vector<32x256xbf16>
    %c0_29 = arith.constant 0 : index
    %c0_30 = arith.constant 0 : index
    %58 = vector.load %arg12[%c0_29, %c0_30] : memref<32x256xbf16, #tpu.memory_space<vmem>>, vector<32x256xbf16>
    tpu.vector_store %arg12[%c0_29, %c0_30], %57 {strides = array<i32>} : memref<32x256xbf16, #tpu.memory_space<vmem>>, vector<32x256xbf16>,
    return
  }
  func.func @transform_0(%arg0: i32) -> (i32, i32) {
    %c0_i32 = arith.constant 0 : i32
    %c0_i32_0 = arith.constant 0 : i32
    return %arg0, %c0_i32 : i32, i32
  }
  func.func @transform_1(%arg0: i32) -> (i32, i32) {
    %c0_i32 = arith.constant 0 : i32
    %c0_i32_0 = arith.constant 0 : i32
    %c0_i32_1 = arith.constant 0 : i32
    return %c0_i32, %c0_i32_0 : i32, i32
  }
  func.func @transform_2(%arg0: i32) -> (i32, i32) {
    %c0_i32 = arith.constant 0 : i32
    %c0_i32_0 = arith.constant 0 : i32
    %c0_i32_1 = arith.constant 0 : i32
    return %c0_i32, %c0_i32_0 : i32, i32
  }
  func.func @transform_3(%arg0: i32) -> (i32, i32) {
    %c0_i32 = arith.constant 0 : i32
    %c0_i32_0 = arith.constant 0 : i32
    %c0_i32_1 = arith.constant 0 : i32
    return %c0_i32, %c0_i32_0 : i32, i32
  }
  func.func @transform_4(%arg0: i32) -> (i32, i32) {
    %c0_i32 = arith.constant 0 : i32
    %c0_i32_0 = arith.constant 0 : i32
    %c0_i32_1 = arith.constant 0 : i32
    return %c0_i32, %c0_i32_0 : i32, i32
  }
  func.func @transform_5(%arg0: i32) -> (i32, i32) {
    %c0_i32 = arith.constant 0 : i32
    %c0_i32_0 = arith.constant 0 : i32
    %c0_i32_1 = arith.constant 0 : i32
    return %c0_i32, %c0_i32_0 : i32, i32
  }
  func.func @transform_6(%arg0: i32) -> (i32, i32) {
    %c0_i32 = arith.constant 0 : i32
    %c0_i32_0 = arith.constant 0 : i32
    %c0_i32_1 = arith.constant 0 : i32
    return %c0_i32, %c0_i32_0 : i32, i32
  }
  func.func @transform_7(%arg0: i32) -> (i32, i32) {
    %c0_i32 = arith.constant 0 : i32
    %c0_i32_0 = arith.constant 0 : i32
    %c0_i32_1 = arith.constant 0 : i32
    return %c0_i32, %c0_i32_0 : i32, i32
  }
  func.func @transform_8(%arg0: i32) -> (i32, i32) {
    %c0_i32 = arith.constant 0 : i32
    %c0_i32_0 = arith.constant 0 : i32
    %c0_i32_1 = arith.constant 0 : i32
    return %c0_i32, %c0_i32_0 : i32, i32
  }
  func.func @transform_9(%arg0: i32) -> (i32, i32) {
    %c0_i32 = arith.constant 0 : i32
    %c0_i32_0 = arith.constant 0 : i32
    return %arg0, %c0_i32 : i32, i32
  }
  func.func @transform_10(%arg0: i32) -> (i32, i32) {
    %c0_i32 = arith.constant 0 : i32
    %c0_i32_0 = arith.constant 0 : i32
    return %arg0, %c0_i32 : i32, i32
  }
  func.func @transform_11(%arg0: i32) -> (i32, i32) {
    %c0_i32 = arith.constant 0 : i32
    %c0_i32_0 = arith.constant 0 : i32
    return %arg0, %c0_i32 : i32, i32
  }
}

</mosaic_0001>

<bundles_post_ra>
// kernel: tpu_custom_call.1
= control target key start
LH: loop header
LB: loop body
LE: loop exit
PB: predicated region body
PF: predicated region fallthrough
CT: control target
= control target key end

     0   :  { %17 = vsyncpa [#allocation3], 0  ;;  %s2223_s0 = inlined_call_operand.hbm [shape: f32[32,256], index: 0, kind: input, shape index: {}]   ;;  %s2224_s1 = inlined_call_operand.hbm [shape: f32[1,256], index: 1, kind: input, shape index: {}]   ;;  %s2225_s2 = inlined_call_operand.hbm [shape: f32[1,256], index: 2, kind: input, shape index: {}]   ;;  %s2226_s3 = inlined_call_operand.hbm [shape: bf16[256,256], index: 3, kind: input, shape index: {}]   ;;  %s2227_s4 = inlined_call_operand.vmem [shape: f32[1,256], index: 4, kind: input, shape index: {}]   ;;  %s2228_s5 = inlined_call_operand.hbm [shape: bf16[256,256], index: 5, kind: input, shape index: {}]   ;;  %s2229_s6 = inlined_call_operand.vmem [shape: f32[1,256], index: 6, kind: input, shape index: {}]   ;;  %s2230_s7 = inlined_call_operand.hbm [shape: bf16[256,256], index: 7, kind: input, shape index: {}]   ;;  %s2231_s8 = inlined_call_operand.vmem [shape: f32[1,256], index: 8, kind: input, shape index: {}]   ;;  %s2232_s9 = inlined_call_operand.hbm [shape: bf16[32,256], index: 9, kind: output, shape index: {0}]   ;;  %s2233_s10 = inlined_call_operand.hbm [shape: bf16[32,256], index: 10, kind: output, shape index: {1}]   ;;  %s2234_s11 = inlined_call_operand.hbm [shape: bf16[32,256], index: 11, kind: output, shape index: {2}]  }
   0x1   :  { %18 = vsyncpa [#allocation6], 0 }
   0x2   :  { %19 = vsyncpa [#allocation9], 0 }
   0x3   :  { %20 = vsyncpa [#allocation12], 0 }
   0x4   :  { %21 = vsyncpa [#allocation4], 0  ;;  %s41_s19 = sshll.u32 %s2224_s1, 4  ;;  %s42_s19 = int_to_ptr.hbm [resolvable:$true] %s41_s19 }
   0x5   :  { %22 = vsyncpa [#allocation15], 0  ;;  %s1917_s20 = smov [#allocation5]   ;;  %s62_s24 = sshll.u32 %s2226_s3, 4  ;;  %s63_s24 = int_to_ptr.hbm [resolvable:$true] %s62_s24 }
   0x6   :  { %s43_s21 = sshll.u32 %s1917_s20, 4  ;;  %s1918_s25 = smov [#allocation8]   ;;  %s44_s21 = int_to_ptr.vmem [resolvable:$true] %s43_s21 }
   0x7   :  { %46 = dma.hbm_to_vmem [thread:$0]  %s42_s19, 32, %s44_s21, [#allocation6]  }
   0x8   :  { %s64_s26 = sshll.u32 %s1918_s25, 4  ;;  %s1919_s27 = smov 128   ;;  %s65_s26 = int_to_ptr.vmem [resolvable:$true] %s64_s26 }
   0x9   :  { %s1920_s28 = smov 8   ;;  %s27_s30 = sshll.u32 %s2223_s0, 4  ;;  %s28_s30 = int_to_ptr.hbm [resolvable:$true] %s27_s30 }
   0xa   :  { %70 = dma.hbm_to_vmem [thread:$0]  %s63_s24, 4096, %s65_s26, [#allocation9], %s1919_s27, %s1919_s27, %s1920_s28  }
   0xb   :  { %s1921_s12 = smov [#allocation2]   ;;  %s52_s15 = sshll.u32 %s2225_s2, 4  ;;  %s53_s15 = int_to_ptr.hbm [resolvable:$true] %s52_s15 }
   0xc   :  { %s29_s13 = sshll.u32 %s1921_s12, 4  ;;  %s1922_s16 = smov 256   ;;  %s30_s13 = int_to_ptr.vmem [resolvable:$true] %s29_s13 }
   0xd   :  { %s1923_s17 = smov 16   ;;  %s1924_s18 = smov [#allocation7]  }
   0xe   :  { %35 = dma.hbm_to_vmem [thread:$0]  %s28_s30, 1024, %s30_s13, [#allocation3], %s1922_s16, %s1922_s16, %s1923_s17  }
   0xf   :  { %s54_s19 = sshll.u32 %s1924_s18, 4  ;;  %s77_s22 = sshll.u32 %s2228_s5, 4  ;;  %s55_s19 = int_to_ptr.vmem [resolvable:$true] %s54_s19  ;;  %s78_s22 = int_to_ptr.hbm [resolvable:$true] %s77_s22 }
  0x10   :  { %57 = dma.hbm_to_vmem [thread:$0]  %s53_s15, 32, %s55_s19, [#allocation6]  }
  0x11   :  { %s92_s24 = sshll.u32 %s2230_s7, 4  ;;  %s1925_s25 = smov [#allocation10]   ;;  %s93_s24 = int_to_ptr.hbm [resolvable:$true] %s92_s24 }
  0x12   :  { %s79_s26 = sshll.u32 %s1925_s25, 4  ;;  %s1926_s2 = smov [#allocation11]   ;;  %s80_s26 = int_to_ptr.vmem [resolvable:$true] %s79_s26 }
  0x13   :  { %85 = dma.hbm_to_vmem [thread:$0]  %s78_s22, 4096, %s80_s26, [#allocation9], %s1919_s27, %s1919_s27, %s1920_s28  }
  0x14   :  { %s94_s1 = sshll.u32 %s1926_s2, 4  ;;  %s95_s1 = int_to_ptr.vmem [resolvable:$true] %s94_s1 }
  0x15   :  { %100 = dma.hbm_to_vmem [thread:$0]  %s93_s24, 4096, %s95_s1, [#allocation12], %s1919_s27, %s1919_s27, %s1920_s28  }
  0x16   :  { %1905 = dma.done.wait [#allocation3], 1024  }
  0x17   :  { %1906 = vsyncadd [#allocation3], 4294966272 }
  0x18   :  { %1907 = dma.done.wait [#allocation6], 64  }
  0x19   :  { %1908 = vsyncadd [#allocation6], 4294967232 }
  0x1a   :  { %1909 = dma.done.wait [#allocation9], 8192  }
  0x1b   :  { %1910 = vsyncadd [#allocation9], 4294959104 }
  0x1c   :  { %1911 = dma.done.wait [#allocation12], 4096  }
  0x1d   :  { %1912 = vsyncadd [#allocation12], 4294963200  ;;  %v131_v0 = vld [vmem:[#allocation2 + $0x20] sm:$0xff]  ;;  %v132_v1 = vld [vmem:[#allocation2 + $0x28] sm:$0xff]  ;;  %v1927_v12 = vmov 256.0   ;;  %s1928_s30 = smov [#allocation13]  }
  0x1e   :  { %v127_v2 = vld [vmem:[#allocation2] sm:$0xff]  ;;  %v143_v3 = vadd.f32 %v132_v1, %v131_v0  ;;  %v128_v4 = vld [vmem:[#allocation2 + $0x8] sm:$0xff]  ;;  %v133_v6 = vld [vmem:[#allocation2 + $0x30] sm:$0xff]  ;;  %1679 = vrcp.f32 %v1927_v12  ;;  %s1132_s12 = sshll.u32 %s1928_s30, 4  ;;  %s1134_s14 = sshll.u32 %s2232_s9, 4  ;;  %s1133_s12 = int_to_ptr.vmem [resolvable:$true] %s1132_s12  ;;  %s1135_s14 = int_to_ptr.hbm [resolvable:$true] %s1134_s14 }
  0x1f   :  { %v137_v5 = vadd.f32 %v128_v4, %v127_v2  ;;  %v134_v7 = vld [vmem:[#allocation2 + $0x38] sm:$0xff]  ;;  %v129_v8 = vld [vmem:[#allocation2 + $0x10] sm:$0xff]  ;;  %v1245_v53 = vld [vmem:[#allocation8 + $0x78] sm:$0xf0]  ;;  %s1929_s15 = smov [#allocation14]   ;;  %s1147_s19 = sshll.u32 %s2233_s10, 4  ;;  %s1148_s19 = int_to_ptr.hbm [resolvable:$true] %s1147_s19 }
  0x20   :  { %144 = vadd.xlane.f32.xlu1 %v143_v3  ;;  %v130_v9 = vld [vmem:[#allocation2 + $0x18] sm:$0xff]  ;;  %v146_v10 = vadd.f32 %v134_v7, %v133_v6  ;;  %v1243_v47 = vld [vmem:[#allocation8 + $0x70] sm:$0xf]  ;;  %v1309_v57 = vld [vmem:[#allocation8 + $0xf8] sm:$0xf0]  ;;  %s1145_s16 = sshll.u32 %s1929_s15, 4  ;;  %s1146_s16 = int_to_ptr.vmem [resolvable:$true] %s1145_s16 }
  0x21   :  { %138 = vadd.xlane.f32.xlu0 %v137_v5  ;;  %v140_v11 = vadd.f32 %v130_v9, %v129_v8  ;;  %v1584_v48 = vld [vmem:[#allocation8 + $0x74] sm:$0xf0]  ;;  %v1307_v49 = vld [vmem:[#allocation8 + $0xf0] sm:$0xf]  ;;  %v1583_v52 = vld [vmem:[#allocation8 + $0x74] sm:$0xf] }
  0x22   :  { %v1244_v50 = vor.u32 %v1584_v48, %v1243_v47  ;;  %v1600_v51 = vld [vmem:[#allocation8 + $0xf4] sm:$0xf0]  ;;  %v1248_v55 = vor.u32 %v1583_v52, %v1245_v53  ;;  %v1599_v56 = vld [vmem:[#allocation8 + $0xf4] sm:$0xf]  ;;  %v1235_v59 = vld [vmem:[#allocation8 + $0x60] sm:$0xf] }
  0x23   :  { %v1308_v54 = vor.u32 %v1600_v51, %v1307_v49  ;;  %v1312_v58 = vor.u32 %v1599_v56, %v1309_v57  ;;  %v1582_v60 = vld [vmem:[#allocation8 + $0x64] sm:$0xf0]  ;;  %v1299_v61 = vld [vmem:[#allocation8 + $0xe0] sm:$0xf]  ;;  %v1301_v5 = vld [vmem:[#allocation8 + $0xe8] sm:$0xf0] }
  0x24   :  { %v1680_v13 = vpop.eup %1679  ;;  %472 = vmatpush.bf16.msra.mxu0 %v1244_v50  ;;  %510 = vmatpush.bf16.msra.mxu2 %v1248_v55  ;;  %v1236_v62 = vor.u32 %v1582_v60, %v1235_v59  ;;  %v1598_v63 = vld [vmem:[#allocation8 + $0xe4] sm:$0xf0]  ;;  %v1579_v12 = vld [vmem:[#allocation8 + $0x54] sm:$0xf]  ;;  %v1277_v50 = vld [vmem:[#allocation8 + $0xb8] sm:$0xf0] }
  0x25   :  { %v150_v14 = vmul.f32 256.0, %v1680_v13  ;;  %vm154_vm0 = vweird.f32 %v1680_v13  ;;  %491 = vmatpush.bf16.msra.mxu1 %v1308_v54  ;;  %529 = vmatpush.bf16.msra.mxu3 %v1312_v58  ;;  %v1591_v49 = vld [vmem:[#allocation8 + $0xb4] sm:$0xf]  ;;  %v1203_v52 = vld [vmem:[#allocation8 + $0x20] sm:$0xf]  ;;  %s1160_s22 = sshll.u32 %s2234_s11, 4  ;;  %s1161_s22 = int_to_ptr.hbm [resolvable:$true] %s1160_s22 }
  0x26   :  { %v1280_v51 = vor.u32 %v1591_v49, %v1277_v50  ;;  %v1574_v53 = vld [vmem:[#allocation8 + $0x24] sm:$0xf0]  ;;  %v1267_v54 = vld [vmem:[#allocation8 + $0xa0] sm:$0xf]  ;;  %v1573_v57 = vld [vmem:[#allocation8 + $0x24] sm:$0xf] }
  0x27   :  { %v151_v15 = vsub.f32 1.0, %v150_v14  ;;  %v1204_v55 = vor.u32 %v1574_v53, %v1203_v52  ;;  %v1590_v56 = vld [vmem:[#allocation8 + $0xa4] sm:$0xf0]  ;;  %v1205_v58 = vld [vmem:[#allocation8 + $0x28] sm:$0xf0] }
  0x28   :  { %147 = vadd.xlane.f32.xlu1 %v146_v10  ;;  %473 = vmatpush.bf16.msra.mxu0 %v1236_v62  ;;  %v1268_v59 = vor.u32 %v1590_v56, %v1267_v54  ;;  %v1208_v60 = vor.u32 %v1573_v57, %v1205_v58  ;;  %v1269_v62 = vld [vmem:[#allocation8 + $0xa8] sm:$0xf0]  ;;  %v1437_v52 = vld [vmem:[#allocation10 + $0xf8] sm:$0xf0]  ;;  %v1613_v53 = vld [vmem:[#allocation10 + $0x64] sm:$0xf] }
  0x29   :  { %141 = vadd.xlane.f32.xlu0 %v140_v11  ;;  %v152_v16 = vmul.f32 %v1680_v13, %v151_v15  ;;  %v1596_v11 = vld [vmem:[#allocation8 + $0xd4] sm:$0xf0]  ;;  %v1365_v56 = vld [vmem:[#allocation10 + $0x68] sm:$0xf0]  ;;  %v1363_v57 = vld [vmem:[#allocation10 + $0x60] sm:$0xf] }
  0x2a   :  { %v1614_v58 = vld [vmem:[#allocation10 + $0x64] sm:$0xf0] }
  0x2b   :  { %v153_v17 = vadd.f32 %v1680_v13, %v152_v16  ;;  %v1595_v16 = vld [vmem:[#allocation8 + $0xd4] sm:$0xf] }
  0x2d   :  { %v2018_v18 = vsel %vm154_vm0, %v1680_v13, %v153_v17  ;;  %v1229_v13 = vld [vmem:[#allocation8 + $0x58] sm:$0xf0] }
  0x2e   :  { %v1232_v15 = vor.u32 %v1579_v12, %v1229_v13  ;;  %v1293_v17 = vld [vmem:[#allocation8 + $0xd8] sm:$0xf0] }
  0x93   :  { %v145_v19 = vpop.xlane.xlu1 %144 }
  0x94   :  { %v158_v20 = vmul.f32 %v2018_v18, %v145_v19  ;;  %v139_v21 = vpop.xlane.xlu0 %138  ;;  %v1296_v19 = vor.u32 %v1595_v16, %v1293_v17  ;;  %v1187_v16 = vld [vmem:[#allocation8] sm:$0xf]  ;;  %v1570_v17 = vld [vmem:[#allocation8 + $0x4] sm:$0xf0] }
  0x95   :  { %v156_v22 = vmul.f32 %v2018_v18, %v139_v21  ;;  %v1578_v21 = vld [vmem:[#allocation8 + $0x44] sm:$0xf0] }
  0x96   :  { %v2022_v23 = vsub.f32 %v131_v0, %v158_v20  ;;  %v2024_v24 = vsub.f32 %v132_v1, %v158_v20  ;;  %v1581_v0 = vld [vmem:[#allocation8 + $0x64] sm:$0xf]  ;;  %v1237_v1 = vld [vmem:[#allocation8 + $0x68] sm:$0xf0]  ;;  %v1219_v20 = vld [vmem:[#allocation8 + $0x40] sm:$0xf] }
  0x97   :  { %v2026_v25 = vsub.f32 %v127_v2, %v156_v22  ;;  %v2028_v26 = vsub.f32 %v128_v4, %v156_v22  ;;  %v1300_v2 = vor.u32 %v1598_v63, %v1299_v61  ;;  %v1240_v3 = vor.u32 %v1581_v0, %v1237_v1  ;;  %v1597_v4 = vld [vmem:[#allocation8 + $0xe4] sm:$0xf]  ;;  %v1283_v22 = vld [vmem:[#allocation8 + $0xc0] sm:$0xf]  ;;  %v1195_v0 = vld [vmem:[#allocation8 + $0x10] sm:$0xf] }
  0x98   :  { %v172_v27 = vmul.f32 %v2022_v23, %v2022_v23  ;;  %v173_v28 = vmul.f32 %v2024_v24, %v2024_v24  ;;  %v1589_v61 = vld [vmem:[#allocation8 + $0xa4] sm:$0xf]  ;;  %v1572_v1 = vld [vmem:[#allocation8 + $0x14] sm:$0xf0] }
  0x99   :  { %v168_v29 = vmul.f32 %v2026_v25, %v2026_v25  ;;  %v169_v30 = vmul.f32 %v2028_v26, %v2028_v26  ;;  %492 = vmatpush.bf16.msra.mxu1 %v1300_v2  ;;  %511 = vmatpush.bf16.msra.mxu2 %v1240_v3  ;;  %v1272_v63 = vor.u32 %v1589_v61, %v1269_v62  ;;  %v1259_v2 = vld [vmem:[#allocation8 + $0x90] sm:$0xf] }
  0x9a   :  { %v182_v31 = vadd.f32 %v173_v28, %v172_v27  ;;  %v1220_v27 = vor.u32 %v1578_v21, %v1219_v20  ;;  %v1594_v28 = vld [vmem:[#allocation8 + $0xc4] sm:$0xf0]  ;;  %v1196_v3 = vor.u32 %v1572_v1, %v1195_v0  ;;  %v1188_v21 = vor.u32 %v1570_v17, %v1187_v16  ;;  %v1628_v16 = vld [vmem:[#allocation10 + $0xd4] sm:$0xf0]  ;;  %v1627_v17 = vld [vmem:[#allocation10 + $0xd4] sm:$0xf] }
  0x9b   :  { %v148_v32 = vpop.xlane.xlu1 %147  ;;  %v176_v33 = vadd.f32 %v169_v30, %v168_v29  ;;  %v1577_v29 = vld [vmem:[#allocation8 + $0x44] sm:$0xf]  ;;  %v1221_v30 = vld [vmem:[#allocation8 + $0x48] sm:$0xf0]  ;;  %v1368_v61 = vor.u32 %v1613_v53, %v1365_v56  ;;  %v1364_v62 = vor.u32 %v1614_v58, %v1363_v57  ;;  %v1630_v0 = vld [vmem:[#allocation10 + $0xe4] sm:$0xf0] }
  0x9c   :  { %v159_v34 = vmul.f32 %v2018_v18, %v148_v32  ;;  %v142_v35 = vpop.xlane.xlu0 %141  ;;  %183 = vadd.xlane.f32.xlu0 %v182_v31  ;;  %v1284_v31 = vor.u32 %v1594_v28, %v1283_v22  ;;  %v1224_v32 = vor.u32 %v1577_v29, %v1221_v30  ;;  %v1586_v22 = vld [vmem:[#allocation8 + $0x84] sm:$0xf0]  ;;  %v1189_v30 = vld [vmem:[#allocation8 + $0x8] sm:$0xf0] }
  0x9d   :  { %v157_v36 = vmul.f32 %v2018_v18, %v142_v35  ;;  %177 = vadd.xlane.f32.xlu2 %v176_v33  ;;  %512 = vmatpush.bf16.msra.mxu2 %v1232_v15  ;;  %v1593_v33 = vld [vmem:[#allocation8 + $0xc4] sm:$0xf] }
  0x9e   :  { %v2040_v37 = vsub.f32 %v133_v6, %v159_v34  ;;  %v2042_v38 = vsub.f32 %v134_v7, %v159_v34  ;;  %v1304_v6 = vor.u32 %v1597_v4, %v1301_v5  ;;  %v1227_v7 = vld [vmem:[#allocation8 + $0x50] sm:$0xf]  ;;  %v1285_v34 = vld [vmem:[#allocation8 + $0xc8] sm:$0xf0]  ;;  %v1588_v4 = vld [vmem:[#allocation8 + $0x94] sm:$0xf0] }
  0x9f   :  { %v2044_v39 = vsub.f32 %v129_v8, %v157_v36  ;;  %v2046_v40 = vsub.f32 %v130_v9, %v157_v36  ;;  %v1580_v8 = vld [vmem:[#allocation8 + $0x54] sm:$0xf0]  ;;  %v1291_v9 = vld [vmem:[#allocation8 + $0xd0] sm:$0xf]  ;;  %v1288_v35 = vor.u32 %v1593_v33, %v1285_v34  ;;  %v1571_v5 = vld [vmem:[#allocation8 + $0x14] sm:$0xf] }
  0xa0   :  { %v174_v41 = vmul.f32 %v2040_v37, %v2040_v37  ;;  %v175_v42 = vmul.f32 %v2042_v38, %v2042_v38  ;;  %530 = vmatpush.bf16.msra.mxu3 %v1304_v6  ;;  %v1228_v10 = vor.u32 %v1580_v8, %v1227_v7  ;;  %v1292_v14 = vor.u32 %v1596_v11, %v1291_v9  ;;  %v1211_v36 = vld [vmem:[#allocation8 + $0x30] sm:$0xf]  ;;  %v1197_v6 = vld [vmem:[#allocation8 + $0x18] sm:$0xf0]  ;;  %v1253_v33 = vld [vmem:[#allocation8 + $0x88] sm:$0xf0] }
  0xa1   :  { %v170_v43 = vmul.f32 %v2044_v39, %v2044_v39  ;;  %v171_v44 = vmul.f32 %v2046_v40, %v2046_v40  ;;  %513 = vmatpush.bf16.msra.mxu2 %v1224_v32  ;;  %v1260_v8 = vor.u32 %v1588_v4, %v1259_v2  ;;  %v1200_v9 = vor.u32 %v1571_v5, %v1197_v6  ;;  %v1261_v11 = vld [vmem:[#allocation8 + $0x98] sm:$0xf0]  ;;  %v1429_v4 = vld [vmem:[#allocation10 + $0xe8] sm:$0xf0]  ;;  %v1611_v6 = vld [vmem:[#allocation10 + $0x54] sm:$0xf] }
  0xa2   :  { %v185_v45 = vadd.f32 %v175_v42, %v174_v41  ;;  %474 = vmatpush.bf16.msra.mxu0 %v1228_v10  ;;  %493 = vmatpush.bf16.msra.mxu1 %v1292_v14  ;;  %v1576_v41 = vld [vmem:[#allocation8 + $0x34] sm:$0xf0]  ;;  %v1275_v42 = vld [vmem:[#allocation8 + $0xb0] sm:$0xf]  ;;  %v1587_v10 = vld [vmem:[#allocation8 + $0x94] sm:$0xf] }
  0xa3   :  { %v179_v46 = vadd.f32 %v171_v44, %v170_v43  ;;  %v1212_v43 = vor.u32 %v1576_v41, %v1211_v36  ;;  %v1592_v44 = vld [vmem:[#allocation8 + $0xb4] sm:$0xf0]  ;;  %v1264_v14 = vor.u32 %v1587_v10, %v1261_v11  ;;  %v1373_v36 = vld [vmem:[#allocation10 + $0x78] sm:$0xf0]  ;;  %v1371_v41 = vld [vmem:[#allocation10 + $0x70] sm:$0xf] }
  0xa4   :  { %186 = vadd.xlane.f32.xlu1 %v185_v45  ;;  %531 = vmatpush.bf16.msra.mxu3 %v1296_v19  ;;  %v1575_v45 = vld [vmem:[#allocation8 + $0x34] sm:$0xf]  ;;  %v1276_v47 = vor.u32 %v1592_v44, %v1275_v42  ;;  %v1251_v19 = vld [vmem:[#allocation8 + $0x80] sm:$0xf]  ;;  %v1616_v44 = vld [vmem:[#allocation10 + $0x74] sm:$0xf0] }
  0xa5   :  { %180 = vadd.xlane.f32.xlu2 %v179_v46  ;;  %v1213_v46 = vld [vmem:[#allocation8 + $0x38] sm:$0xf0]  ;;  %v1252_v29 = vor.u32 %v1586_v22, %v1251_v19  ;;  %v1372_v49 = vor.u32 %v1616_v44, %v1371_v41  ;;  %v1355_v10 = vld [vmem:[#allocation10 + $0x50] sm:$0xf]  ;;  %v1612_v11 = vld [vmem:[#allocation10 + $0x54] sm:$0xf0] }
  0xa6   :  { %475 = vmatpush.bf16.msra.mxu0 %v1220_v27  ;;  %494 = vmatpush.bf16.msra.mxu1 %v1284_v31  ;;  %v1216_v48 = vor.u32 %v1575_v45, %v1213_v46  ;;  %v1569_v27 = vld [vmem:[#allocation8 + $0x4] sm:$0xf]  ;;  %v1435_v45 = vld [vmem:[#allocation10 + $0xf0] sm:$0xf]  ;;  %v1632_v46 = vld [vmem:[#allocation10 + $0xf4] sm:$0xf0] }
  0xa7   :  { %v1585_v31 = vld [vmem:[#allocation8 + $0x84] sm:$0xf]  ;;  %v1192_v32 = vor.u32 %v1569_v27, %v1189_v30  ;;  %v1436_v50 = vor.u32 %v1632_v46, %v1435_v45  ;;  %v1349_v30 = vld [vmem:[#allocation10 + $0x48] sm:$0xf0]  ;;  %v1626_v44 = vld [vmem:[#allocation10 + $0xc4] sm:$0xf0] }
  0xa8   :  { %532 = vmatpush.bf16.msra.mxu3 %v1288_v35  ;;  %514 = vmatpush.bf16.msra.mxu2 %v1216_v48  ;;  %v1256_v34 = vor.u32 %v1585_v31, %v1253_v33  ;;  %v1615_v35 = vld [vmem:[#allocation10 + $0x74] sm:$0xf]  ;;  %v1609_v22 = vld [vmem:[#allocation10 + $0x44] sm:$0xf]  ;;  %v1347_v31 = vld [vmem:[#allocation10 + $0x40] sm:$0xf] }
  0xa9   :  { %v1625_v45 = vld [vmem:[#allocation10 + $0xc4] sm:$0xf] }
  0xaa   :  { %476 = vmatpush.bf16.msra.mxu0 %v1212_v43  ;;  %495 = vmatpush.bf16.msra.mxu1 %v1276_v47  ;;  %v1376_v43 = vor.u32 %v1615_v35, %v1373_v36  ;;  %v1610_v35 = vld [vmem:[#allocation10 + $0x44] sm:$0xf0]  ;;  %v1411_v36 = vld [vmem:[#allocation10 + $0xc0] sm:$0xf] }
  0xac   :  { %533 = vmatpush.bf16.msra.mxu3 %v1280_v51  ;;  %515 = vmatpush.bf16.msra.mxu2 %v1208_v60  ;;  %v1631_v51 = vld [vmem:[#allocation10 + $0xf4] sm:$0xf] }
  0xae   :  { %477 = vmatpush.bf16.msra.mxu0 %v1204_v55  ;;  %496 = vmatpush.bf16.msra.mxu1 %v1268_v59  ;;  %v1440_v55 = vor.u32 %v1631_v51, %v1437_v52 }
  0xb0   :  { %534 = vmatpush.bf16.msra.mxu3 %v1272_v63  ;;  %516 = vmatpush.bf16.msra.mxu2 %v1200_v9  ;;  %v1427_v63 = vld [vmem:[#allocation10 + $0xe0] sm:$0xf] }
  0xb2   :  { %478 = vmatpush.bf16.msra.mxu0 %v1196_v3  ;;  %497 = vmatpush.bf16.msra.mxu1 %v1260_v8  ;;  %v1629_v3 = vld [vmem:[#allocation10 + $0xe4] sm:$0xf] }
  0xb3   :  { %v1432_v9 = vor.u32 %v1629_v3, %v1429_v4  ;;  %v1608_v4 = vld [vmem:[#allocation10 + $0x34] sm:$0xf0] }
  0xb4   :  { %535 = vmatpush.bf16.msra.mxu3 %v1264_v14  ;;  %517 = vmatpush.bf16.msra.mxu2 %v1192_v32  ;;  %v1356_v14 = vor.u32 %v1612_v11, %v1355_v10  ;;  %v135_v32 = vld [vmem:[#allocation5] sm:$0x3] }
  0xb6   :  { %479 = vmatpush.bf16.msra.mxu0 %v1188_v21  ;;  %498 = vmatpush.bf16.msra.mxu1 %v1252_v29  ;;  %v1421_v21 = vld [vmem:[#allocation10 + $0xd8] sm:$0xf0] }
  0xb7   :  { %v1424_v29 = vor.u32 %v1627_v17, %v1421_v21  ;;  %v1333_v21 = vld [vmem:[#allocation10 + $0x28] sm:$0xf0] }
  0xb8   :  { %536 = vmatpush.bf16.msra.mxu3 %v1256_v34  ;;  %784 = vmatpush.bf16.msrb.mxu2 %v1376_v43  ;;  %v1352_v34 = vor.u32 %v1609_v22, %v1349_v30  ;;  %v1348_v43 = vor.u32 %v1610_v35, %v1347_v31  ;;  %v1331_v22 = vld [vmem:[#allocation10 + $0x20] sm:$0xf]  ;;  %v1622_v30 = vld [vmem:[#allocation10 + $0xa4] sm:$0xf0]  ;;  %v1603_v35 = vld [vmem:[#allocation10 + $0x14] sm:$0xf] }
  0xba   :  { %746 = vmatpush.bf16.msrb.mxu0 %v1372_v49  ;;  %765 = vmatpush.bf16.msrb.mxu1 %v1436_v50  ;;  %v1413_v49 = vld [vmem:[#allocation10 + $0xc8] sm:$0xf0]  ;;  %v136_v50 = vld [vmem:[#allocation7] sm:$0x3] }
  0xbb   :  { %v1416_v53 = vor.u32 %v1625_v45, %v1413_v49 }
  0xbc   :  { %803 = vmatpush.bf16.msrb.mxu3 %v1440_v55  ;;  %785 = vmatpush.bf16.msrb.mxu2 %v1368_v61  ;;  %v2095_v55 = vperm.slane %v135_v32, 1  ;;  %v1607_v61 = vld [vmem:[#allocation10 + $0x34] sm:$0xf] }
  0xbe   :  { %747 = vmatpush.bf16.msrb.mxu0 %v1364_v62  ;;  %v1341_v62 = vld [vmem:[#allocation10 + $0x38] sm:$0xf0] }
  0xbf   :  { %v1344_v3 = vor.u32 %v1607_v61, %v1341_v62  ;;  %v1601_v61 = vld [vmem:[#allocation10 + $0x4] sm:$0xf]  ;;  %v1317_v62 = vld [vmem:[#allocation10 + $0x8] sm:$0xf0] }
  0xc0   :  { %804 = vmatpush.bf16.msrb.mxu3 %v1432_v9  ;;  %v1623_v9 = vld [vmem:[#allocation10 + $0xb4] sm:$0xf] }
  0xc2   :  { %748 = vmatpush.bf16.msrb.mxu0 %v1356_v14  ;;  %v1605_v14 = vld [vmem:[#allocation10 + $0x24] sm:$0xf] }
  0xc4   :  { %805 = vmatpush.bf16.msrb.mxu3 %v1424_v29  ;;  %v1395_v29 = vld [vmem:[#allocation10 + $0xa0] sm:$0xf] }
  0xc6   :  { %749 = vmatpush.bf16.msrb.mxu0 %v1348_v43  ;;  %v1323_v43 = vld [vmem:[#allocation10 + $0x10] sm:$0xf] }
  0xc8   :  { %806 = vmatpush.bf16.msrb.mxu3 %v1416_v53 }
 0x10f   :  { %v184_v7 = vpop.xlane.xlu0 %183 }
 0x110   :  { %v178_v12 = vpop.xlane.xlu2 %177  ;;  %v190_v13 = vmul.f32 %v184_v7, %v2018_v18  ;;  %v1357_v7 = vld [vmem:[#allocation10 + $0x58] sm:$0xf0] }
 0x111   :  { %v188_v15 = vmul.f32 %v178_v12, %v2018_v18 }
 0x112   :  { %v2058_v20 = vadd.f32 1e-05, %v190_v13  ;;  %v1360_v13 = vor.u32 %v1611_v6, %v1357_v7  ;;  %v2109_v6 = vperm.slane %v136_v50, 1 }
 0x113   :  { %v2060_v28 = vadd.f32 1e-05, %v188_v15  ;;  %v1419_v15 = vld [vmem:[#allocation10 + $0xd0] sm:$0xf] }
 0x114   :  { %1681 = vrsqrt.f32 %v2058_v20  ;;  %v1420_v19 = vor.u32 %v1628_v16, %v1419_v15  ;;  %786 = vmatpush.bf16.msrb.mxu2 %v1360_v13  ;;  %v1405_v13 = vld [vmem:[#allocation10 + $0xb8] sm:$0xf0]  ;;  %vm222_vm7 = vweird.f32 %v2058_v20 }
 0x115   :  { %1683 = vrsqrt.f32 %v2060_v28  ;;  %vm202_vm2 = vweird.f32 %v2060_v28 }
 0x117   :  { %v187_v42 = vpop.xlane.xlu1 %186 }
 0x118   :  { %v191_v47 = vmul.f32 %v187_v42, %v2018_v18  ;;  %v181_v48 = vpop.xlane.xlu2 %180  ;;  %787 = vmatpush.bf16.msrb.mxu2 %v1352_v34  ;;  %v1397_v34 = vld [vmem:[#allocation10 + $0xa8] sm:$0xf0] }
 0x119   :  { %v189_v54 = vmul.f32 %v181_v48, %v2018_v18  ;;  %v1428_v18 = vor.u32 %v1630_v0, %v1427_v63  ;;  %v1412_v48 = vor.u32 %v1626_v44, %v1411_v36  ;;  %v1339_v63 = vld [vmem:[#allocation10 + $0x30] sm:$0xf]  ;;  %v2104_v0 = vperm.slane %v136_v50, 0  ;;  %v1604_v44 = vld [vmem:[#allocation10 + $0x14] sm:$0xf0] }
 0x11a   :  { %v2066_v59 = vpop.eup %1681  ;;  %v2068_v60 = vadd.f32 1e-05, %v191_v47  ;;  %v1340_v7 = vor.u32 %v1608_v4, %v1339_v63  ;;  %v1387_v50 = vld [vmem:[#allocation10 + $0x90] sm:$0xf]  ;;  %v1315_v63 = vld [vmem:[#allocation10] sm:$0xf] }
 0x11b   :  { %v2070_v1 = vpop.eup %1683  ;;  %v2072_v2 = vadd.f32 1e-05, %v189_v54  ;;  %v217_v8 = vmul.f32 %v2066_v59, %v2058_v20  ;;  %766 = vmatpush.bf16.msrb.mxu1 %v1428_v18  ;;  %v2093_v54 = vperm.slane %v135_v32, 0  ;;  %v1396_v32 = vor.u32 %v1622_v30, %v1395_v29  ;;  %v1379_v4 = vld [vmem:[#allocation10 + $0x80] sm:$0xf] }
 0x11c   :  { %v197_v5 = vmul.f32 %v2070_v1, %v2060_v28  ;;  %1685 = vrsqrt.f32 %v2068_v60  ;;  %vm203_vm1 = vweird.f32 %v2070_v1  ;;  %788 = vmatpush.bf16.msrb.mxu2 %v1344_v3  ;;  %750 = vmatpush.bf16.msrb.mxu0 %v1340_v7  ;;  %vm232_vm8 = vweird.f32 %v2068_v60  ;;  %v1563_v29 = vld [vmem:[#allocation11 + $0xf0] sm:$0xf]  ;;  %v1664_v30 = vld [vmem:[#allocation11 + $0xf4] sm:$0xf0] }
 0x11d   :  { %1687 = vrsqrt.f32 %v2072_v2  ;;  %v218_v33 = vmul.f32 %v2066_v59, %v217_v8  ;;  %vm204_vm3 = vmor %vm202_vm2, %vm203_vm1  ;;  %v1624_v8 = vld [vmem:[#allocation10 + $0xb4] sm:$0xf0]  ;;  %vm212_vm5 = vweird.f32 %v2072_v2  ;;  %vm223_vm10 = vweird.f32 %v2066_v59 }
 0x11e   :  { %v198_v12 = vmul.f32 %v2070_v1, %v197_v5  ;;  %v1403_v5 = vld [vmem:[#allocation10 + $0xb0] sm:$0xf]  ;;  %v1320_v3 = vor.u32 %v1601_v61, %v1317_v62  ;;  %vm224_vm12 = vmor %vm222_vm7, %vm223_vm10  ;;  %v1660_v62 = vld [vmem:[#allocation11 + $0xd4] sm:$0xf0] }
 0x11f   :  { %767 = vmatpush.bf16.msrb.mxu1 %v1420_v19  ;;  %v2099_v56 = vmul.f32 0.5, %v218_v33  ;;  %v1621_v33 = vld [vmem:[#allocation10 + $0xa4] sm:$0xf] }
 0x120   :  { %v199_v27 = vmul.f32 0.5, %v198_v12  ;;  %v1404_v12 = vor.u32 %v1624_v8, %v1403_v5  ;;  %v1400_v36 = vor.u32 %v1621_v33, %v1397_v34  ;;  %v1618_v8 = vld [vmem:[#allocation10 + $0x84] sm:$0xf0]  ;;  %v1645_v33 = vld [vmem:[#allocation11 + $0x64] sm:$0xf] }
 0x121   :  { %v220_v11 = vsub.f32 1.5, %v2099_v56 }
 0x122   :  { %v2082_v41 = vpop.eup %1685  ;;  %v200_v42 = vsub.f32 1.5, %v199_v27  ;;  %v1606_v27 = vld [vmem:[#allocation10 + $0x24] sm:$0xf0] }
 0x123   :  { %v2085_v46 = vpop.eup %1687  ;;  %v227_v47 = vmul.f32 %v2082_v41, %v2068_v60  ;;  %768 = vmatpush.bf16.msrb.mxu1 %v1412_v48  ;;  %v1332_v31 = vor.u32 %v1606_v27, %v1331_v22  ;;  %vm233_vm9 = vweird.f32 %v2082_v41  ;;  %v221_v5 = vmul.f32 %v2066_v59, %v220_v11  ;;  %v1499_v22 = vld [vmem:[#allocation11 + $0x70] sm:$0xf]  ;;  %v1648_v27 = vld [vmem:[#allocation11 + $0x74] sm:$0xf0] }
 0x124   :  { %v201_v51 = vmul.f32 %v2070_v1, %v200_v42  ;;  %v207_v52 = vmul.f32 %v2085_v46, %v2072_v2  ;;  %vm213_vm4 = vweird.f32 %v2085_v46  ;;  %v1336_v2 = vor.u32 %v1605_v14, %v1333_v21  ;;  %v1325_v42 = vld [vmem:[#allocation10 + $0x18] sm:$0xf0]  ;;  %vm234_vm11 = vmor %vm232_vm8, %vm233_vm9 }
 0x125   :  { %v228_v57 = vmul.f32 %v2082_v41, %v227_v47  ;;  %vm2118_vm6 = vmor %vm212_vm5, %vm213_vm4  ;;  %751 = vmatpush.bf16.msrb.mxu0 %v1332_v31  ;;  %v1328_v49 = vor.u32 %v1603_v35, %v1325_v42  ;;  %v1501_v21 = vld [vmem:[#allocation11 + $0x78] sm:$0xf0]  ;;  %v1663_v31 = vld [vmem:[#allocation11 + $0xf4] sm:$0xf] }
 0x126   :  { %v205_v58 = vsel %vm204_vm3, %v2070_v1, %v201_v51  ;;  %v208_v28 = vmul.f32 %v2085_v46, %v207_v52  ;;  %789 = vmatpush.bf16.msrb.mxu2 %v1336_v2  ;;  %v1620_v51 = vld [vmem:[#allocation10 + $0x94] sm:$0xf0]  ;;  %v1619_v52 = vld [vmem:[#allocation10 + $0x94] sm:$0xf]  ;;  %v225_v2 = vsel %vm224_vm12, %v2066_v59, %v221_v5  ;;  %v1491_v42 = vld [vmem:[#allocation11 + $0x60] sm:$0xf] }
 0x127   :  { %v2106_v18 = vmul.f32 0.5, %v228_v57  ;;  %v236_v10 = vmul.f32 %v205_v58, %v2026_v25  ;;  %v237_v15 = vmul.f32 %v205_v58, %v2028_v26  ;;  %v1408_v25 = vor.u32 %v1623_v9, %v1405_v13  ;;  %769 = vmatpush.bf16.msrb.mxu1 %v1404_v12  ;;  %v1617_v9 = vld [vmem:[#allocation10 + $0x84] sm:$0xf] }
 0x128   :  { %v209_v1 = vmul.f32 0.5, %v208_v28  ;;  %v1324_v57 = vor.u32 %v1604_v44, %v1323_v43  ;;  %v1388_v58 = vor.u32 %v1620_v51, %v1387_v50  ;;  %v1389_v28 = vld [vmem:[#allocation10 + $0x98] sm:$0xf0]  ;;  %v1646_v43 = vld [vmem:[#allocation11 + $0x64] sm:$0xf0]  ;;  %v240_v44 = vmul.f32 %v225_v2, %v2022_v23 }
 0x129   :  { %v230_v16 = vsub.f32 1.5, %v2106_v18  ;;  %807 = vmatpush.bf16.msrb.mxu3 %v1408_v25  ;;  %v249_v45 = vmul.f32 %v2093_v54, %v236_v10  ;;  %v250_v47 = vmul.f32 %v2095_v55, %v237_v15  ;;  %v1602_v18 = vld [vmem:[#allocation10 + $0x4] sm:$0xf0]  ;;  %v1381_v10 = vld [vmem:[#allocation10 + $0x88] sm:$0xf0]  ;;  %v241_v51 = vmul.f32 %v225_v2, %v2024_v24 }
 0x12a   :  { %v210_v17 = vsub.f32 1.5, %v209_v1  ;;  %790 = vmatpush.bf16.msrb.mxu2 %v1328_v49  ;;  %752 = vmatpush.bf16.msrb.mxu0 %v1324_v57  ;;  %v1316_v7 = vor.u32 %v1602_v18, %v1315_v63  ;;  %v1384_v19 = vor.u32 %v1617_v9, %v1381_v10  ;;  %v1647_v25 = vld [vmem:[#allocation11 + $0x74] sm:$0xf]  ;;  %v1662_v49 = vld [vmem:[#allocation11 + $0xe4] sm:$0xf0]  ;;  %v253_v18 = vmul.f32 %v2093_v54, %v240_v44 }
 0x12b   :  { %770 = vmatpush.bf16.msrb.mxu1 %v1396_v32  ;;  %v231_v1 = vmul.f32 %v2082_v41, %v230_v16  ;;  %v262_v12 = vadd.f32 %v2104_v0, %v249_v45  ;;  %v263_v13 = vadd.f32 %v2109_v6, %v250_v47  ;;  %v1504_v20 = vor.u32 %v1647_v25, %v1501_v21  ;;  %v1565_v32 = vld [vmem:[#allocation11 + $0xf8] sm:$0xf0]  ;;  %v1661_v50 = vld [vmem:[#allocation11 + $0xe4] sm:$0xf]  ;;  %v1483_v57 = vld [vmem:[#allocation11 + $0x50] sm:$0xf] }
 0x12c   :  { %v211_v26 = vmul.f32 %v2085_v46, %v210_v17  ;;  %v1380_v17 = vor.u32 %v1618_v8, %v1379_v4  ;;  %v1568_v35 = vor.u32 %v1663_v31, %v1565_v32  ;;  %v1492_v47 = vor.u32 %v1646_v43, %v1491_v42  ;;  %v1549_v63 = vld [vmem:[#allocation11 + $0xd8] sm:$0xf0]  ;;  %v1642_v8 = vld [vmem:[#allocation11 + $0x44] sm:$0xf0]  ;;  %v1639_v2 = vld [vmem:[#allocation11 + $0x34] sm:$0xf] }
 0x12d   :  { %808 = vmatpush.bf16.msrb.mxu3 %v1400_v36  ;;  %v235_v60 = vsel %vm234_vm11, %v2082_v41, %v231_v1  ;;  %v1564_v41 = vor.u32 %v1664_v30, %v1563_v29  ;;  %v1493_v36 = vld [vmem:[#allocation11 + $0x68] sm:$0xf0]  ;;  %v1640_v29 = vld [vmem:[#allocation11 + $0x34] sm:$0xf0]  ;;  %v1533_v31 = vld [vmem:[#allocation11 + $0xb8] sm:$0xf0] }
 0x12e   :  { %v215_v48 = vsel %vm2118_vm6, %v2085_v46, %v211_v26  ;;  %v1392_v46 = vor.u32 %v1619_v52, %v1389_v28  ;;  %791 = vmatpush.bf16.msrb.mxu2 %v1320_v3  ;;  %753 = vmatpush.bf16.msrb.mxu0 %v1316_v7  ;;  %v1500_v26 = vor.u32 %v1648_v27, %v1499_v22  ;;  %v1643_v52 = vld [vmem:[#allocation11 + $0x54] sm:$0xf]  ;;  %v1547_v28 = vld [vmem:[#allocation11 + $0xd0] sm:$0xf]  ;;  %v1477_v1 = vld [vmem:[#allocation11 + $0x48] sm:$0xf0] }
 0x12f   :  { %v238_v53 = vmul.f32 %v215_v48, %v2044_v39  ;;  %v239_v56 = vmul.f32 %v215_v48, %v2046_v40  ;;  %771 = vmatpush.bf16.msrb.mxu1 %v1388_v58  ;;  %v242_v34 = vmul.f32 %v235_v60, %v2040_v37  ;;  %v243_v59 = vmul.f32 %v235_v60, %v2042_v38  ;;  %v1555_v48 = vld [vmem:[#allocation11 + $0xe0] sm:$0xf]  ;;  %v1557_v38 = vld [vmem:[#allocation11 + $0xe8] sm:$0xf0]  ;;  %v1644_v58 = vld [vmem:[#allocation11 + $0x54] sm:$0xf0] }
 0x130   :  { %v1496_v45 = vor.u32 %v1645_v33, %v1493_v36  ;;  %v1556_v37 = vor.u32 %v1662_v49, %v1555_v48  ;;  %v254_v3 = vmul.f32 %v2095_v55, %v241_v51  ;;  %v1548_v4 = vor.u32 %v1660_v62, %v1547_v28  ;;  %v1475_v7 = vld [vmem:[#allocation11 + $0x40] sm:$0xf]  ;;  %v1467_v27 = vld [vmem:[#allocation11 + $0x30] sm:$0xf]  ;;  %v1656_v30 = vld [vmem:[#allocation11 + $0xb4] sm:$0xf0] }
 0x131   :  { %v251_v39 = vmul.f32 %v2093_v54, %v238_v53  ;;  %v252_v40 = vmul.f32 %v2095_v55, %v239_v56  ;;  %809 = vmatpush.bf16.msrb.mxu3 %v1392_v46  ;;  %v1485_v53 = vld [vmem:[#allocation11 + $0x58] sm:$0xf0]  ;;  %v1560_v56 = vor.u32 %v1661_v50, %v1557_v38  ;;  %v255_v23 = vmul.f32 %v2093_v54, %v242_v34  ;;  %v1659_v46 = vld [vmem:[#allocation11 + $0xd4] sm:$0xf]  ;;  %v1637_v32 = vld [vmem:[#allocation11 + $0x24] sm:$0xf] }
 0x132   :  { %v256_v61 = vmul.f32 %v2095_v55, %v243_v59  ;;  %v1488_v24 = vor.u32 %v1643_v52, %v1485_v53  ;;  %v1552_v5 = vor.u32 %v1659_v46, %v1549_v63  ;;  %v266_v55 = vadd.f32 %v2104_v0, %v253_v18  ;;  %v1461_v59 = vld [vmem:[#allocation11 + $0x28] sm:$0xf0]  ;;  %v1638_v36 = vld [vmem:[#allocation11 + $0x24] sm:$0xf0]  ;;  %v1523_v44 = vld [vmem:[#allocation11 + $0xa0] sm:$0xf] }
 0x133   :  { %v264_v14 = vadd.f32 %v2104_v0, %v251_v39  ;;  %v265_v11 = vadd.f32 %v2109_v6, %v252_v40  ;;  %772 = vmatpush.bf16.msrb.mxu1 %v1380_v17  ;;  %v1484_v39 = vor.u32 %v1644_v58, %v1483_v57  ;;  %v1641_v40 = vld [vmem:[#allocation11 + $0x44] sm:$0xf]  ;;  %v268_v9 = vadd.f32 %v2104_v0, %v255_v23  ;;  %v1541_v17 = vld [vmem:[#allocation11 + $0xc8] sm:$0xf0]  ;;  %v1635_v49 = vld [vmem:[#allocation11 + $0x14] sm:$0xf] }
 0x134   :  { %v269_v10 = vadd.f32 %v2109_v6, %v256_v61  ;;  %v1480_v54 = vor.u32 %v1641_v40, %v1477_v1  ;;  %v1464_v42 = vor.u32 %v1637_v32, %v1461_v59  ;;  %v1525_v48 = vld [vmem:[#allocation11 + $0xa8] sm:$0xf0]  ;;  %v1453_v50 = vld [vmem:[#allocation11 + $0x18] sm:$0xf0]  ;;  %v1451_v51 = vld [vmem:[#allocation11 + $0x10] sm:$0xf] }
 0x135   :  { %v2150_v15 = vpack.c.bf16 %v264_v14, %v262_v12  ;;  %v2152_v16 = vpack.c.bf16 %v265_v11, %v263_v13  ;;  %810 = vmatpush.bf16.msrb.mxu3 %v1384_v19  ;;  %v1539_v12 = vld [vmem:[#allocation11 + $0xc0] sm:$0xf]  ;;  %v1476_v13 = vor.u32 %v1642_v8, %v1475_v7  ;;  %v1658_v14 = vld [vmem:[#allocation11 + $0xc4] sm:$0xf0]  ;;  %v1657_v11 = vld [vmem:[#allocation11 + $0xc4] sm:$0xf]  ;;  %v267_v19 = vadd.f32 %v2109_v6, %v254_v3 }
 0x136   :  { %v2172_v60 = vpack.c.bf16 %v268_v9, %v266_v55  ;;  %v1540_v21 = vor.u32 %v1658_v14, %v1539_v12  ;;  %v1544_v22 = vor.u32 %v1657_v11, %v1541_v17  ;;  %v1531_v6 = vld [vmem:[#allocation11 + $0xb0] sm:$0xf]  ;;  %v1456_v57 = vor.u32 %v1635_v49, %v1453_v50  ;;  %v1651_v28 = vld [vmem:[#allocation11 + $0x94] sm:$0xf]  ;;  %v1517_v23 = vld [vmem:[#allocation11 + $0x98] sm:$0xf0] }
 0x137   :  { %480 = vmatmul.bf16.vlgmr.msra.gmra.mxu0 %v2150_v15  ;;  %499 = vmatmul.bf16.vlgmr.msra.gmra.mxu1 %v2152_v16  ;;  %v2174_v25 = vpack.c.bf16 %v269_v10, %v267_v19  ;;  %v1532_v33 = vor.u32 %v1656_v30, %v1531_v6  ;;  %v1515_v53 = vld [vmem:[#allocation11 + $0x90] sm:$0xf]  ;;  %v1633_v61 = vld [vmem:[#allocation11 + $0x4] sm:$0xf]  ;;  %v1445_v62 = vld [vmem:[#allocation11 + $0x8] sm:$0xf0] }
 0x138   :  { %518 = vmatmul.bf16.vlgmr.msra.gmra.mxu2 %v2150_v15  ;;  %537 = vmatmul.bf16.vlgmr.msra.gmra.mxu3 %v2152_v16  ;;  %v1443_v46 = vld [vmem:[#allocation11] sm:$0xf]  ;;  %v1634_v63 = vld [vmem:[#allocation11 + $0x4] sm:$0xf0]  ;;  %v1448_v40 = vor.u32 %v1633_v61, %v1445_v62  ;;  %v1509_v1 = vld [vmem:[#allocation11 + $0x88] sm:$0xf0] }
 0x139   :  { %1058 = vmatpush.bf16.msra.mxu2 %v1504_v20  ;;  %1020 = vmatpush.bf16.msra.mxu0 %v1500_v26  ;;  %v1469_v20 = vld [vmem:[#allocation11 + $0x38] sm:$0xf0]  ;;  %v1468_v26 = vor.u32 %v1640_v29, %v1467_v27  ;;  %v1444_v3 = vor.u32 %v1634_v63, %v1443_v46 }
 0x13a   :  { %1039 = vmatpush.bf16.msra.mxu1 %v1564_v41  ;;  %1077 = vmatpush.bf16.msra.mxu3 %v1568_v35  ;;  %v1472_v0 = vor.u32 %v1639_v2, %v1469_v20  ;;  %v1655_v41 = vld [vmem:[#allocation11 + $0xb4] sm:$0xf]  ;;  %v1459_v35 = vld [vmem:[#allocation11 + $0x20] sm:$0xf]  ;;  %v306_v9 = vld [vmem:[%s2227_s4] sm:$0x3] }
 0x13b   :  { %v1536_v34 = vor.u32 %v1655_v41, %v1533_v31  ;;  %v1460_v43 = vor.u32 %v1638_v36, %v1459_v35  ;;  %v308_v10 = vperm.slane %v306_v9, 0  ;;  %v309_v14 = vperm.slane %v306_v9, 1 }
 0x13d   :  { %1059 = vmatpush.bf16.msra.mxu2 %v1496_v45  ;;  %1021 = vmatpush.bf16.msra.mxu0 %v1492_v47  ;;  %v1654_v45 = vld [vmem:[#allocation11 + $0xa4] sm:$0xf0]  ;;  %v1653_v47 = vld [vmem:[#allocation11 + $0xa4] sm:$0xf] }
 0x13e   :  { %1040 = vmatpush.bf16.msra.mxu1 %v1556_v37  ;;  %1078 = vmatpush.bf16.msra.mxu3 %v1560_v56  ;;  %v1636_v37 = vld [vmem:[#allocation11 + $0x14] sm:$0xf0]  ;;  %v1524_v38 = vor.u32 %v1654_v45, %v1523_v44  ;;  %v1528_v52 = vor.u32 %v1653_v47, %v1525_v48 }
 0x13f   :  { %v1652_v56 = vld [vmem:[#allocation11 + $0x94] sm:$0xf0]  ;;  %v1452_v58 = vor.u32 %v1636_v37, %v1451_v51  ;;  %v580_v37 = vld [vmem:[%s2229_s6] sm:$0x3] }
 0x140   :  { %v1516_v18 = vor.u32 %v1652_v56, %v1515_v53  ;;  %v583_v61 = vperm.slane %v580_v37, 1 }
 0x141   :  { %1060 = vmatpush.bf16.msra.mxu2 %v1488_v24  ;;  %1022 = vmatpush.bf16.msra.mxu0 %v1484_v39  ;;  %v1520_v24 = vor.u32 %v1651_v28, %v1517_v23  ;;  %v1507_v39 = vld [vmem:[#allocation11 + $0x80] sm:$0xf] }
 0x142   :  { %1041 = vmatpush.bf16.msra.mxu1 %v1548_v4  ;;  %1079 = vmatpush.bf16.msra.mxu3 %v1552_v5  ;;  %v1650_v4 = vld [vmem:[#allocation11 + $0x84] sm:$0xf0]  ;;  %v1649_v5 = vld [vmem:[#allocation11 + $0x84] sm:$0xf] }
 0x143   :  { %v1508_v7 = vor.u32 %v1650_v4, %v1507_v39  ;;  %v1512_v8 = vor.u32 %v1649_v5, %v1509_v1 }
 0x145   :  { %1061 = vmatpush.bf16.msra.mxu2 %v1480_v54  ;;  %1023 = vmatpush.bf16.msra.mxu0 %v1476_v13 }
 0x146   :  { %1042 = vmatpush.bf16.msra.mxu1 %v1540_v21  ;;  %1080 = vmatpush.bf16.msra.mxu3 %v1544_v22 }
 0x147   :  { %485 = vmatmul.bf16.gmra.mxu0 %v2172_v60  ;;  %504 = vmatmul.bf16.gmra.mxu1 %v2174_v25 }
 0x148   :  { %523 = vmatmul.bf16.gmra.mxu2 %v2172_v60  ;;  %542 = vmatmul.bf16.gmra.mxu3 %v2174_v25 }
 0x149   :  { %1062 = vmatpush.bf16.msra.mxu2 %v1472_v0  ;;  %1024 = vmatpush.bf16.msra.mxu0 %v1468_v26 }
 0x14a   :  { %1043 = vmatpush.bf16.msra.mxu1 %v1532_v33  ;;  %1081 = vmatpush.bf16.msra.mxu3 %v1536_v34 }
 0x14d   :  { %1063 = vmatpush.bf16.msra.mxu2 %v1464_v42  ;;  %1025 = vmatpush.bf16.msra.mxu0 %v1460_v43 }
 0x14e   :  { %1044 = vmatpush.bf16.msra.mxu1 %v1524_v38  ;;  %1082 = vmatpush.bf16.msra.mxu3 %v1528_v52 }
 0x151   :  { %1064 = vmatpush.bf16.msra.mxu2 %v1456_v57  ;;  %1026 = vmatpush.bf16.msra.mxu0 %v1452_v58  ;;  %v582_v58 = vperm.slane %v580_v37, 0 }
 0x152   :  { %1045 = vmatpush.bf16.msra.mxu1 %v1516_v18  ;;  %1083 = vmatpush.bf16.msra.mxu3 %v1520_v24 }
 0x155   :  { %1065 = vmatpush.bf16.msra.mxu2 %v1448_v40  ;;  %1027 = vmatpush.bf16.msra.mxu0 %v1444_v3 }
 0x156   :  { %1046 = vmatpush.bf16.msra.mxu1 %v1508_v7  ;;  %1084 = vmatpush.bf16.msra.mxu3 %v1512_v8 }
 0x157   :  { %754 = vmatmul.bf16.vlgmr.msrb.gmra.mxu0 %v2150_v15  ;;  %773 = vmatmul.bf16.vlgmr.msrb.gmra.mxu1 %v2152_v16 }
 0x158   :  { %792 = vmatmul.bf16.vlgmr.msrb.gmra.mxu2 %v2150_v15  ;;  %811 = vmatmul.bf16.vlgmr.msrb.gmra.mxu3 %v2152_v16 }
 0x167   :  { %759 = vmatmul.bf16.gmra.mxu0 %v2172_v60  ;;  %778 = vmatmul.bf16.gmra.mxu1 %v2174_v25 }
 0x168   :  { %797 = vmatmul.bf16.gmra.mxu2 %v2172_v60  ;;  %816 = vmatmul.bf16.gmra.mxu3 %v2174_v25 }
 0x177   :  { %1028 = vmatmul.bf16.vlgmr.msra.gmra.mxu0 %v2150_v15  ;;  %1047 = vmatmul.bf16.vlgmr.msra.gmra.mxu1 %v2152_v16 }
 0x178   :  { %1066 = vmatmul.bf16.vlgmr.msra.gmra.mxu2 %v2150_v15  ;;  %1085 = vmatmul.bf16.vlgmr.msra.gmra.mxu3 %v2152_v16 }
 0x187   :  { %1033 = vmatmul.bf16.gmra.mxu0 %v2172_v60  ;;  %1052 = vmatmul.bf16.gmra.mxu1 %v2174_v25 }
 0x188   :  { %1071 = vmatmul.bf16.gmra.mxu2 %v2172_v60  ;;  %1090 = vmatmul.bf16.gmra.mxu3 %v2174_v25 }
 0x1b4   :  { %v481_v12 = vpop.f32.mrf.mxu0  ;;  %v500_v54 = vpop.f32.mrf.mxu1 }
 0x1b5   :  { %v482_v13 = vadd.f32 %v481_v12, %v308_v10 }
 0x1b7   :  { %v501_v16 = vadd.f32 %v500_v54, %v482_v13 }
 0x1b9   :  { %v1096_v22 = vmul.f32 0.125, %v501_v16 }
 0x1bb   :  { %v519_v15 = vpop.f32.mrf.mxu2  ;;  %v538_v11 = vpop.f32.mrf.mxu3 }
 0x1bc   :  { %v520_v17 = vadd.f32 %v519_v15, %v309_v14  ;;  %v483_v55 = vpop.f32.mrf.mxu0  ;;  %v502_v19 = vpop.f32.mrf.mxu1 }
 0x1bd   :  { %v484_v2 = vadd.f32 %v483_v55, %v308_v10 }
 0x1be   :  { %v539_v21 = vadd.f32 %v538_v11, %v520_v17 }
 0x1bf   :  { %v503_v0 = vadd.f32 %v502_v19, %v484_v2 }
 0x1c0   :  { %v1097_v60 = vmul.f32 0.125, %v539_v21 }
 0x1c1   :  { %v1098_v41 = vmul.f32 0.125, %v503_v0 }
 0x1c2   :  { %v1104_v25 = vpack.c.bf16 %v1097_v60, %v1096_v22 }
 0x1c3   :  { %v521_v20 = vpop.f32.mrf.mxu2  ;;  %v540_v27 = vpop.f32.mrf.mxu3 }
 0x1c4   :  { %1108 = vst [vmem:[#allocation13] sm:$0xff] %v1104_v25  ;;  %v522_v29 = vadd.f32 %v521_v20, %v309_v14  ;;  %v486_v6 = vpop.f32.mrf.mxu0  ;;  %v505_v30 = vpop.f32.mrf.mxu1 }
 0x1c5   :  { %v487_v32 = vadd.f32 %v486_v6, %v308_v10 }
 0x1c6   :  { %v541_v26 = vadd.f32 %v540_v27, %v522_v29  ;;  %v854_v27 = vld [vmem:[%s2231_s8] sm:$0x3]  ;;  %s1930_s8 = smov [#allocation16]  }
 0x1c7   :  { %v506_v35 = vadd.f32 %v505_v30, %v487_v32  ;;  %v857_v32 = vperm.slane %v854_v27, 1  ;;  %s1158_s10 = sshll.u32 %s1930_s8, 4  ;;  %s1159_s10 = int_to_ptr.vmem [resolvable:$true] %s1158_s10 }
 0x1c8   :  { %v1099_v31 = vmul.f32 0.125, %v541_v26  ;;  %v856_v26 = vperm.slane %v854_v27, 0 }
 0x1c9   :  { %v1100_v45 = vmul.f32 0.125, %v506_v35 }
 0x1ca   :  { %v1105_v33 = vpack.c.bf16 %v1099_v31, %v1098_v41 }
 0x1cb   :  { %v524_v34 = vpop.f32.mrf.mxu2  ;;  %v543_v59 = vpop.f32.mrf.mxu3 }
 0x1cc   :  { %1109 = vst [vmem:[#allocation13 + $0x8] sm:$0xff] %v1105_v33  ;;  %v525_v36 = vadd.f32 %v524_v34, %v309_v14  ;;  %v488_v42 = vpop.f32.mrf.mxu0  ;;  %v507_v43 = vpop.f32.mrf.mxu1 }
 0x1cd   :  { %v489_v48 = vadd.f32 %v488_v42, %v308_v10 }
 0x1ce   :  { %v544_v44 = vadd.f32 %v543_v59, %v525_v36 }
 0x1cf   :  { %v508_v38 = vadd.f32 %v507_v43, %v489_v48 }
 0x1d0   :  { %v1101_v47 = vmul.f32 0.125, %v544_v44 }
 0x1d1   :  { %v1102_v28 = vmul.f32 0.125, %v508_v38 }
 0x1d2   :  { %v1106_v49 = vpack.c.bf16 %v1101_v47, %v1100_v45 }
 0x1d3   :  { %v526_v50 = vpop.f32.mrf.mxu2  ;;  %v545_v51 = vpop.f32.mrf.mxu3 }
 0x1d4   :  { %1110 = vst [vmem:[#allocation13 + $0x10] sm:$0xff] %v1106_v49  ;;  %v527_v52 = vadd.f32 %v526_v50, %v309_v14  ;;  %v755_v53 = vpop.f32.mrf.mxu0  ;;  %v774_v56 = vpop.f32.mrf.mxu1 }
 0x1d5   :  { %v756_v46 = vadd.f32 %v755_v53, %v582_v58 }
 0x1d6   :  { %v546_v57 = vadd.f32 %v545_v51, %v527_v52 }
 0x1d7   :  { %v775_v3 = vadd.f32 %v774_v56, %v756_v46 }
 0x1d8   :  { %v1103_v23 = vmul.f32 0.125, %v546_v57 }
 0x1da   :  { %v1107_v62 = vpack.c.bf16 %v1103_v23, %v1102_v28 }
 0x1db   :  { %v793_v63 = vpop.f32.mrf.mxu2  ;;  %v812_v18 = vpop.f32.mrf.mxu3 }
 0x1dc   :  { %1111 = vst [vmem:[#allocation13 + $0x18] sm:$0xff] %v1107_v62  ;;  %v794_v24 = vadd.f32 %v793_v63, %v583_v61  ;;  %v757_v39 = vpop.f32.mrf.mxu0  ;;  %v776_v40 = vpop.f32.mrf.mxu1 }
 0x1dd   :  { %1140 = dma.vmem_to_hbm [thread:$0]  %s1133_s12, 512, %s1135_s14, [#allocation4], %s1919_s27, %s1919_s27, %s1920_s28   ;;  %v758_v1 = vadd.f32 %v757_v39, %v582_v58 }
 0x1de   :  { %v813_v4 = vadd.f32 %v812_v18, %v794_v24 }
 0x1df   :  { %v777_v54 = vadd.f32 %v776_v40, %v758_v1 }
 0x1e0   :  { %v1112_v5 = vpack.c.bf16 %v813_v4, %v775_v3 }
 0x1e2   :  { %1116 = vst [vmem:[#allocation14] sm:$0xff] %v1112_v5 }
 0x1e3   :  { %v795_v7 = vpop.f32.mrf.mxu2  ;;  %v814_v8 = vpop.f32.mrf.mxu3 }
 0x1e4   :  { %v796_v9 = vadd.f32 %v795_v7, %v583_v61  ;;  %v760_v10 = vpop.f32.mrf.mxu0  ;;  %v779_v12 = vpop.f32.mrf.mxu1 }
 0x1e5   :  { %v761_v15 = vadd.f32 %v760_v10, %v582_v58 }
 0x1e6   :  { %v815_v13 = vadd.f32 %v814_v8, %v796_v9 }
 0x1e7   :  { %v780_v21 = vadd.f32 %v779_v12, %v761_v15 }
 0x1e8   :  { %v1113_v14 = vpack.c.bf16 %v815_v13, %v777_v54 }
 0x1ea   :  { %1117 = vst [vmem:[#allocation14 + $0x8] sm:$0xff] %v1113_v14 }
 0x1eb   :  { %v798_v11 = vpop.f32.mrf.mxu2  ;;  %v817_v16 = vpop.f32.mrf.mxu3 }
 0x1ec   :  { %v799_v17 = vadd.f32 %v798_v11, %v583_v61  ;;  %v762_v55 = vpop.f32.mrf.mxu0  ;;  %v781_v19 = vpop.f32.mrf.mxu1 }
 0x1ed   :  { %v763_v2 = vadd.f32 %v762_v55, %v582_v58 }
 0x1ee   :  { %v818_v22 = vadd.f32 %v817_v16, %v799_v17 }
 0x1ef   :  { %v782_v6 = vadd.f32 %v781_v19, %v763_v2 }
 0x1f0   :  { %v1114_v60 = vpack.c.bf16 %v818_v22, %v780_v21 }
 0x1f2   :  { %1118 = vst [vmem:[#allocation14 + $0x10] sm:$0xff] %v1114_v60 }
 0x1f3   :  { %v800_v25 = vpop.f32.mrf.mxu2  ;;  %v819_v20 = vpop.f32.mrf.mxu3 }
 0x1f4   :  { %v801_v0 = vadd.f32 %v800_v25, %v583_v61  ;;  %v1029_v29 = vpop.f32.mrf.mxu0  ;;  %v1048_v41 = vpop.f32.mrf.mxu1 }
 0x1f5   :  { %v1030_v33 = vadd.f32 %v1029_v29, %v856_v26 }
 0x1f6   :  { %v820_v30 = vadd.f32 %v819_v20, %v801_v0 }
 0x1f7   :  { %v1049_v42 = vadd.f32 %v1048_v41, %v1030_v33 }
 0x1f8   :  { %v1115_v31 = vpack.c.bf16 %v820_v30, %v782_v6 }
 0x1fa   :  { %1119 = vst [vmem:[#allocation14 + $0x18] sm:$0xff] %v1115_v31 }
 0x1fb   :  { %v1067_v34 = vpop.f32.mrf.mxu2  ;;  %v1086_v59 = vpop.f32.mrf.mxu3  ;;  %1153 = dma.vmem_to_hbm [thread:$0]  %s1146_s16, 512, %s1148_s19, [#allocation15], %s1919_s27, %s1919_s27, %s1920_s28  }
 0x1fc   :  { %v1068_v35 = vadd.f32 %v1067_v34, %v857_v32  ;;  %v1031_v36 = vpop.f32.mrf.mxu0  ;;  %v1050_v45 = vpop.f32.mrf.mxu1 }
 0x1fd   :  { %v1032_v47 = vadd.f32 %v1031_v36, %v856_v26 }
 0x1fe   :  { %v1087_v43 = vadd.f32 %v1086_v59, %v1068_v35 }
 0x1ff   :  { %v1051_v37 = vadd.f32 %v1050_v45, %v1032_v47 }
 0x200   :  { %v1120_v44 = vpack.c.bf16 %v1087_v43, %v1049_v42 }
 0x202   :  { %1124 = vst [vmem:[#allocation16] sm:$0xff] %v1120_v44 }
 0x203   :  { %v1069_v48 = vpop.f32.mrf.mxu2  ;;  %v1088_v49 = vpop.f32.mrf.mxu3 }
 0x204   :  { %v1070_v50 = vadd.f32 %v1069_v48, %v857_v32  ;;  %v1034_v51 = vpop.f32.mrf.mxu0  ;;  %v1053_v56 = vpop.f32.mrf.mxu1 }
 0x205   :  { %v1035_v53 = vadd.f32 %v1034_v51, %v856_v26 }
 0x206   :  { %v1089_v38 = vadd.f32 %v1088_v49, %v1070_v50 }
 0x207   :  { %v1054_v23 = vadd.f32 %v1053_v56, %v1035_v53 }
 0x208   :  { %v1121_v52 = vpack.c.bf16 %v1089_v38, %v1051_v37 }
 0x20a   :  { %1125 = vst [vmem:[#allocation16 + $0x8] sm:$0xff] %v1121_v52 }
 0x20b   :  { %v1072_v57 = vpop.f32.mrf.mxu2  ;;  %v1091_v58 = vpop.f32.mrf.mxu3 }
 0x20c   :  { %v1073_v28 = vadd.f32 %v1072_v57, %v857_v32  ;;  %v1036_v62 = vpop.f32.mrf.mxu0  ;;  %v1055_v39 = vpop.f32.mrf.mxu1 }
 0x20d   :  { %v1037_v63 = vadd.f32 %v1036_v62, %v856_v26 }
 0x20e   :  { %v1092_v61 = vadd.f32 %v1091_v58, %v1073_v28 }
 0x20f   :  { %v1056_v3 = vadd.f32 %v1055_v39, %v1037_v63 }
 0x210   :  { %v1122_v46 = vpack.c.bf16 %v1092_v61, %v1054_v23 }
 0x212   :  { %1126 = vst [vmem:[#allocation16 + $0x10] sm:$0xff] %v1122_v46 }
 0x213   :  { %v1074_v18 = vpop.f32.mrf.mxu2  ;;  %v1093_v40 = vpop.f32.mrf.mxu3 }
 0x214   :  { %v1075_v24 = vadd.f32 %v1074_v18, %v857_v32 }
 0x216   :  { %v1094_v4 = vadd.f32 %v1093_v40, %v1075_v24 }
 0x218   :  { %v1123_v5 = vpack.c.bf16 %v1094_v4, %v1056_v3 }
 0x21a   :  { %1127 = vst [vmem:[#allocation16 + $0x18] sm:$0xff] %v1123_v5 }
 0x21b   :  { %1166 = dma.vmem_to_hbm [thread:$0]  %s1159_s10, 512, %s1161_s22, [#allocation15], %s1919_s27, %s1919_s27, %s1920_s28  }
 0x21c   :  { %1913 = dma.done.wait [#allocation4], 512  }
 0x21d   :  { %1914 = vsyncadd [#allocation4], 4294966784 }
 0x21e   :  { %1915 = dma.done.wait [#allocation15], 1024  }
 0x21f   :  { %1916 = vsyncadd [#allocation15], 4294966272 }
 0x220   :  { %1179 = vsyncpa [#allocation3], 1 }
 0x221   :  { %1180 = vsyncpa [#allocation6], 1 }
 0x222   :  { %1181 = vsyncpa [#allocation9], 1 }
 0x223   :  { %1182 = vsyncpa [#allocation12], 1 }
 0x224   :  { %1183 = vsyncpa [#allocation4], 1 }
 0x225   :  { %1184 = vsyncpa [#allocation15], 1 }

</bundles_post_ra>
